<compile_context>
chip_gen: v5e
topology: v5e:2x2
jax: 0.10.0
libtpu: 0.0.40
codegen_flags: <defaults>
</compile_context>

<pallas_src>
import functools

import jax
import jax.numpy as jnp
from jax import lax
from jax.experimental import pallas as pl
from jax.experimental.pallas import tpu as pltpu

EPS = 1e-5


# ---------------------------------------------------------------------------
# In-kernel helpers
# ---------------------------------------------------------------------------
def _fold_mat(cout, lanes):
    """(lanes, cout) 0/1 selector: lane (w*cout + c) -> channel c (lane fold)."""
    lane_c = lax.broadcasted_iota(jnp.int32, (lanes, cout), 0) % cout
    col = lax.broadcasted_iota(jnp.int32, (lanes, cout), 1)
    return (lane_c == col).astype(jnp.float32)


def _bcast_mat(cout, lanes):
    """(cout, lanes) 0/1 selector: channel c -> every lane w*cout + c (broadcast)."""
    row = lax.broadcasted_iota(jnp.int32, (cout, lanes), 0)
    lane_c = lax.broadcasted_iota(jnp.int32, (cout, lanes), 1) % cout
    return (lane_c == row).astype(jnp.float32)


def _conv3x3_rows(x, w_ref, h):
    """3x3 'same' conv of ONE image; rows on sublanes, (w, c) folded on lanes.

    x: (H, W*Cin) lane-dense rows.  w_ref: (3, W*Cin, W*Cout) block-banded per-ky
    matrices.  The +-1 row taps are built in-register with pltpu.roll (XLU) and
    masked at the top/bottom image rows; the in-row (kx) taps live in the band.
    """
    hidx = lax.broadcasted_iota(jnp.int32, (h, 1), 0)
    acc = jnp.dot(x, w_ref[1], preferred_element_type=jnp.float32)          # ky = 1
    up = jnp.where(hidx >= 1, pltpu.roll(x, 1, axis=0), 0.0)                # row r-1
    acc = acc + jnp.dot(up, w_ref[0], preferred_element_type=jnp.float32)   # ky = 0
    dn = jnp.where(hidx <= h - 2, pltpu.roll(x, h - 1, axis=0), 0.0)        # row r+1
    acc = acc + jnp.dot(dn, w_ref[2], preferred_element_type=jnp.float32)   # ky = 2
    return acc


def _image_stats(acc, cout, hw):
    """Per-image, per-channel (sum, centered M2) of a (H, W*cout) tile.

    Sublane row-sums go to the XLU; only tiny (1, W*C) @ (W*C, C) folds touch the
    MXU.  Centered M2 keeps the variance numerically well-conditioned.
    """
    lanes = acc.shape[1]
    fold = _fold_mat(cout, lanes)
    rs = jnp.sum(acc, axis=0, keepdims=True)                                  # (1, W*C)
    ch_sum = jnp.dot(rs, fold, preferred_element_type=jnp.float32)            # (1, C)
    mean_l = jnp.dot(ch_sum * (1.0 / hw), _bcast_mat(cout, lanes),
                     preferred_element_type=jnp.float32)                      # (1, W*C)
    cen = acc - mean_l
    rs2 = jnp.sum(cen * cen, axis=0, keepdims=True)
    ch_m2 = jnp.dot(rs2, fold, preferred_element_type=jnp.float32)            # (1, C)
    return ch_sum, ch_m2


# ---------------------------------------------------------------------------
# Kernels (grid = one image per step, "parallel")
# ---------------------------------------------------------------------------
def _conv1_kernel(x_ref, w_ref, y_ref, s_ref, m_ref, *, H, W, Cout):
    acc = _conv3x3_rows(x_ref[0], w_ref, H)
    y_ref[0] = acc                                       # pre-BN conv_1 output
    ch_sum, ch_m2 = _image_stats(acc, Cout, float(H * W))
    s_ref[0] = ch_sum
    m_ref[0] = ch_m2


def _conv2_kernel(y1_ref, sc_ref, sh_ref, w_ref, y_ref, s_ref, m_ref, *, H, W, Cout):
    lanes = W * Cout
    bc = _bcast_mat(Cout, lanes)
    scale_l = jnp.dot(sc_ref[...], bc, preferred_element_type=jnp.float32)
    shift_l = jnp.dot(sh_ref[...], bc, preferred_element_type=jnp.float32)
    y1 = jnp.maximum(y1_ref[0] * scale_l + shift_l, 0.0)   # bn_1 + relu, in-register
    acc = _conv3x3_rows(y1, w_ref, H)                      # center tap fed from y1 vregs
    y_ref[0] = acc                                         # pre-BN conv_2 output
    ch_sum, ch_m2 = _image_stats(acc, Cout, float(H * W))
    s_ref[0] = ch_sum
    m_ref[0] = ch_m2


def _bn_relu_kernel(y_ref, sc_ref, sh_ref, o_ref, *, W, Cout):
    lanes = W * Cout
    bc = _bcast_mat(Cout, lanes)
    scale_l = jnp.dot(sc_ref[...], bc, preferred_element_type=jnp.float32)
    shift_l = jnp.dot(sh_ref[...], bc, preferred_element_type=jnp.float32)
    o_ref[0] = jnp.maximum(y_ref[0] * scale_l + shift_l, 0.0)


# ---------------------------------------------------------------------------
# Host-side glue
# ---------------------------------------------------------------------------
def _banded_weights(w, width):
    """OIHW (cout, cin, 3, 3) -> (3, width*cin, width*cout) block-banded matrices.

    mats[ky][wi*cin + ci, wo*cout + co] = w[co, ci, ky, (wi - wo) + 1] for
    |wi - wo| <= 1 (zero otherwise): in-row taps + channel mix fold into one lane
    contraction; the W boundary (zero padding along w) is encoded by the band.
    """
    mats = []
    for ky in range(3):
        m = 0.0
        for kx in range(3):
            band = jnp.eye(width, k=-(kx - 1), dtype=jnp.float32)
            m = m + jnp.kron(band, jnp.transpose(w[:, :, ky, kx]))
        mats.append(m)
    return jnp.stack(mats)


def _finalize_bn(ch_sum, ch_m2, gamma, beta, hw):
    """Combine per-image (sum, centered M2) partials -> train-mode BN scale/shift."""
    n = ch_sum.shape[0]
    cnt = n * hw
    s = ch_sum[:, 0, :]                                   # (N, C)
    m2 = ch_m2[:, 0, :]                                   # (N, C)
    mean = jnp.sum(s, axis=0) / cnt                       # (C,)
    mean_img = s / hw
    var = (jnp.sum(m2, axis=0)
           + hw * jnp.sum(jnp.square(mean_img - mean[None, :]), axis=0)) / cnt  # biased
    scale = gamma * lax.rsqrt(var + EPS)
    shift = beta - mean * scale
    return scale.reshape(1, -1), shift.reshape(1, -1)


def block_forward(x_nchw, w1, g1, b1, w2, g2, b2):
    """Pallas implementation of Block.forward.  x_nchw: (N, Cin, H, W) float32."""
    N, Cin, H, W = x_nchw.shape
    Cout = w1.shape[0]
    assert H >= 2 and W >= 2
    # Lane-dense fast-path assumptions (unmasked full-width stores, aligned tiles).
    # TODO(synk): pad W*Cout to a multiple of 128 / H to a multiple of 8 for general shapes.
    assert (W * Cout) % 128 == 0 and H % 8 == 0

    Lin, Lout = W * Cin, W * Cout
    hw = float(H * W)

    x_rows = jnp.transpose(x_nchw, (0, 2, 3, 1)).reshape(N, H, Lin)
    w1_band = _banded_weights(w1, W)                      # (3, Lin, Lout)
    w2_band = _banded_weights(w2, W)                      # (3, Lout, Lout)

    params = pltpu.CompilerParams(dimension_semantics=("parallel",))

    def img_spec(rows, lanes):
        return pl.BlockSpec((1, rows, lanes), lambda i: (i, 0, 0))

    def rep_spec(shape):                                  # same block every step
        nd = len(shape)
        return pl.BlockSpec(shape, lambda i, _nd=nd: (0,) * _nd)

    stats_shape = jax.ShapeDtypeStruct((N, 1, Cout), jnp.float32)

    # ---- pass A: conv_1 per image + per-image BN1 partial moments -----------
    y1_pre, s1, m1 = pl.pallas_call(
        functools.partial(_conv1_kernel, H=H, W=W, Cout=Cout),
        out_shape=(jax.ShapeDtypeStruct((N, H, Lout), jnp.float32),
                   stats_shape, stats_shape),
        grid_spec=pltpu.PrefetchScalarGridSpec(
            num_scalar_prefetch=0, grid=(N,),
            in_specs=[img_spec(H, Lin), rep_spec((3, Lin, Lout))],
            out_specs=[img_spec(H, Lout), img_spec(1, Cout), img_spec(1, Cout)]),
        compiler_params=params,
    )(x_rows, w1_band)

    scale1, shift1 = _finalize_bn(s1, m1, g1, b1, hw)

    # ---- pass B: bn_1 + relu + conv_2 per image + BN2 partial moments -------
    y2_pre, s2, m2 = pl.pallas_call(
        functools.partial(_conv2_kernel, H=H, W=W, Cout=Cout),
        out_shape=(jax.ShapeDtypeStruct((N, H, Lout), jnp.float32),
                   stats_shape, stats_shape),
        grid_spec=pltpu.PrefetchScalarGridSpec(
            num_scalar_prefetch=0, grid=(N,),
            in_specs=[img_spec(H, Lout), rep_spec((1, Cout)), rep_spec((1, Cout)),
                      rep_spec((3, Lout, Lout))],
            out_specs=[img_spec(H, Lout), img_spec(1, Cout), img_spec(1, Cout)]),
        compiler_params=params,
    )(y1_pre, scale1, shift1, w2_band)

    scale2, shift2 = _finalize_bn(s2, m2, g2, b2, hw)

    # ---- pass C: bn_2 + relu --------------------------------------------------
    out_rows = pl.pallas_call(
        functools.partial(_bn_relu_kernel, W=W, Cout=Cout),
        out_shape=jax.ShapeDtypeStruct((N, H, Lout), jnp.float32),
        grid_spec=pltpu.PrefetchScalarGridSpec(
            num_scalar_prefetch=0, grid=(N,),
            in_specs=[img_spec(H, Lout), rep_spec((1, Cout)), rep_spec((1, Cout))],
            out_specs=img_spec(H, Lout)),
        compiler_params=params,
    )(y2_pre, scale2, shift2)

    # lane-dense (N, H, W*Cout) -> NCHW
    return jnp.transpose(out_rows.reshape(N, H, W, Cout), (0, 3, 1, 2))


def block_reference(x, w1, g1, b1, w2, g2, b2):
    """Pure-JAX reference matching PyTorch Block.forward (train-mode BN)."""
    def conv(x, w):
        return lax.conv_general_dilated(
            x, w, (1, 1), ((1, 1), (1, 1)),
            dimension_numbers=("NCHW", "OIHW", "NCHW"))

    def bn_relu(x, g, b):
        mean = jnp.mean(x, axis=(0, 2, 3), keepdims=True)
        var = jnp.mean(jnp.square(x - mean), axis=(0, 2, 3), keepdims=True)
        y = (x - mean) * lax.rsqrt(var + EPS) * g.reshape(1, -1, 1, 1) + b.reshape(1, -1, 1, 1)
        return jnp.maximum(y, 0.0)

    return bn_relu(conv(bn_relu(conv(x, w1), g1, b1), w2), g2, b2)


if __name__ == "__main__":
    N, Cin, Cout, H, W = 2, 4, 8, 16, 16
    key = jax.random.PRNGKey(0)
    kx, k1, k2, kg1, kb1, kg2, kb2 = jax.random.split(key, 7)

    x = jax.random.normal(kx, (N, Cin, H, W), jnp.float32)
    # Conv2d(c_in, c_out, 3, padding=1, bias=False) weights, kaiming-ish scale
    w1 = jax.random.normal(k1, (Cout, Cin, 3, 3), jnp.float32) * (2.0 / (Cin * 9)) ** 0.5
    w2 = jax.random.normal(k2, (Cout, Cout, 3, 3), jnp.float32) * (2.0 / (Cout * 9)) ** 0.5
    # BatchNorm2d affine params (deterministic, non-trivial to exercise the kernels)
    g1 = 1.0 + 0.1 * jax.random.normal(kg1, (Cout,), jnp.float32)
    b1 = 0.1 * jax.random.normal(kb1, (Cout,), jnp.float32)
    g2 = 1.0 + 0.1 * jax.random.normal(kg2, (Cout,), jnp.float32)
    b2 = 0.1 * jax.random.normal(kb2, (Cout,), jnp.float32)

    out = jax.block_until_ready(jax.jit(block_forward)(x, w1, g1, b1, w2, g2, b2))
    ref = jax.block_until_ready(block_reference(x, w1, g1, b1, w2, g2, b2))

    assert out.shape == (N, Cout, H, W) and out.dtype == jnp.float32
    max_err = float(jnp.max(jnp.abs(out - ref)))
    assert jnp.allclose(out, ref, atol=5e-4, rtol=5e-4), max_err
    print("KERNEL_OK")
</pallas_src>

<mosaic_0001>
module attributes {stable_mosaic.version = 11 : i64} {
  func.func @_conv1_kernel(%arg0: i32, %arg1: memref<1x16x64xf32, #tpu.memory_space<vmem>>, %arg2: memref<3x64x128xf32, #tpu.memory_space<vmem>>, %arg3: memref<1x16x128xf32, #tpu.memory_space<vmem>>, %arg4: memref<1x1x8xf32, #tpu.memory_space<vmem>>, %arg5: memref<1x1x8xf32, #tpu.memory_space<vmem>>) attributes {dimension_semantics = [#tpu.dimension_semantics<parallel>], iteration_bounds = array<i64: 2>, scalar_prefetch = 0 : i64, scratch_operands = 0 : i64, tpu.core_type = #tpu.core_type<tc>, window_params = [{transform_indices = @transform_0, window_bounds = array<i64: 1, 16, 64>}, {pipeline_mode = #tpu.pipeline_mode<synchronous>, transform_indices = @transform_1, window_bounds = array<i64: 3, 64, 128>}, {transform_indices = @transform_2, window_bounds = array<i64: 1, 16, 128>}, {transform_indices = @transform_3, window_bounds = array<i64: 1, 1, 8>}, {transform_indices = @transform_4, window_bounds = array<i64: 1, 1, 8>}]} {
    %c0 = arith.constant 0 : index
    %c0_0 = arith.constant 0 : index
    %c0_1 = arith.constant 0 : index
    %0 = vector.load %arg1[%c0, %c0_0, %c0_1] : memref<1x16x64xf32, #tpu.memory_space<vmem>>, vector<1x16x64xf32>
    %1 = vector.shape_cast %0 : vector<1x16x64xf32> to vector<16x64xf32>
    %2 = tpu.iota {dimensions = array<i32: 0>} : vector<16x1xi32>
    %c1 = arith.constant 1 : index
    %c0_2 = arith.constant 0 : index
    %c0_3 = arith.constant 0 : index
    %3 = vector.load %arg2[%c1, %c0_2, %c0_3] : memref<3x64x128xf32, #tpu.memory_space<vmem>>, vector<1x64x128xf32>
    %4 = vector.shape_cast %3 : vector<1x64x128xf32> to vector<64x128xf32>
    %cst = arith.constant dense<0.000000e+00> : vector<16x128xf32>
    %5 = tpu.matmul %1, %4, %cst {dimension_numbers = #tpu.dot_dimension_numbers<[1], [0], [0], [1], [0, 0, 1, 1], [], []>} : vector<16x64xf32>, vector<64x128xf32>, vector<16x128xf32> -> vector<16x128xf32>
    %c1_i32 = arith.constant 1 : i32
    %6 = vector.broadcast %c1_i32 : i32 to vector<16x1xi32>
    %7 = arith.cmpi sge, %2, %6 : vector<16x1xi32>
    %c1_i32_4 = arith.constant 1 : i32
    %8 = tpu.dynamic_rotate %1 by %c1_i32_4 dim 0 : vector<16x64xf32>, i32 -> vector<16x64xf32>
    %cst_5 = arith.constant 0.000000e+00 : f32
    %9 = vector.shape_cast %7 : vector<16x1xi1> to vector<16x1xi1>
    %10 = vector.broadcast %9 : vector<16x1xi1> to vector<16x64xi1>
    %11 = vector.broadcast %cst_5 : f32 to vector<16x64xf32>
    %12 = arith.select %10, %8, %11 : vector<16x64xi1>, vector<16x64xf32>
    %c0_6 = arith.constant 0 : index
    %c0_7 = arith.constant 0 : index
    %c0_8 = arith.constant 0 : index
    %13 = vector.load %arg2[%c0_6, %c0_7, %c0_8] : memref<3x64x128xf32, #tpu.memory_space<vmem>>, vector<1x64x128xf32>
    %14 = vector.shape_cast %13 : vector<1x64x128xf32> to vector<64x128xf32>
    %cst_9 = arith.constant dense<0.000000e+00> : vector<16x128xf32>
    %15 = tpu.matmul %12, %14, %cst_9 {dimension_numbers = #tpu.dot_dimension_numbers<[1], [0], [0], [1], [0, 0, 1, 1], [], []>} : vector<16x64xf32>, vector<64x128xf32>, vector<16x128xf32> -> vector<16x128xf32>
    %16 = arith.addf %5, %15 : vector<16x128xf32>
    %c14_i32 = arith.constant 14 : i32
    %17 = vector.broadcast %c14_i32 : i32 to vector<16x1xi32>
    %18 = arith.cmpi sle, %2, %17 : vector<16x1xi32>
    %c15_i32 = arith.constant 15 : i32
    %19 = tpu.dynamic_rotate %1 by %c15_i32 dim 0 : vector<16x64xf32>, i32 -> vector<16x64xf32>
    %cst_10 = arith.constant 0.000000e+00 : f32
    %20 = vector.shape_cast %18 : vector<16x1xi1> to vector<16x1xi1>
    %21 = vector.broadcast %20 : vector<16x1xi1> to vector<16x64xi1>
    %22 = vector.broadcast %cst_10 : f32 to vector<16x64xf32>
    %23 = arith.select %21, %19, %22 : vector<16x64xi1>, vector<16x64xf32>
    %c2 = arith.constant 2 : index
    %c0_11 = arith.constant 0 : index
    %c0_12 = arith.constant 0 : index
    %24 = vector.load %arg2[%c2, %c0_11, %c0_12] : memref<3x64x128xf32, #tpu.memory_space<vmem>>, vector<1x64x128xf32>
    %25 = vector.shape_cast %24 : vector<1x64x128xf32> to vector<64x128xf32>
    %cst_13 = arith.constant dense<0.000000e+00> : vector<16x128xf32>
    %26 = tpu.matmul %23, %25, %cst_13 {dimension_numbers = #tpu.dot_dimension_numbers<[1], [0], [0], [1], [0, 0, 1, 1], [], []>} : vector<16x64xf32>, vector<64x128xf32>, vector<16x128xf32> -> vector<16x128xf32>
    %27 = arith.addf %16, %26 : vector<16x128xf32>
    %c0_14 = arith.constant 0 : index
    %c0_15 = arith.constant 0 : index
    %c0_16 = arith.constant 0 : index
    %28 = vector.load %arg3[%c0_14, %c0_15, %c0_16] : memref<1x16x128xf32, #tpu.memory_space<vmem>>, vector<1x16x128xf32>
    %29 = vector.shape_cast %28 : vector<1x16x128xf32> to vector<16x128xf32>
    %30 = vector.shape_cast %27 : vector<16x128xf32> to vector<1x16x128xf32>
    tpu.vector_store %arg3[%c0_14, %c0_15, %c0_16], %30 {strides = array<i32>} : memref<1x16x128xf32, #tpu.memory_space<vmem>>, vector<1x16x128xf32>,
    %31 = tpu.iota {dimensions = array<i32: 0>} : vector<128x8xi32>
    %c8_i32 = arith.constant 8 : i32
    %c0_i32 = arith.constant 0 : i32
    %32 = arith.cmpi eq, %c8_i32, %c0_i32 : i32
    %c1_i32_17 = arith.constant 1 : i32
    %33 = arith.select %32, %c1_i32_17, %c8_i32 : i32
    %34 = vector.broadcast %33 : i32 to vector<128x8xi32>
    %35 = arith.remsi %31, %34 : vector<128x8xi32>
    %c0_i32_18 = arith.constant 0 : i32
    %36 = vector.broadcast %c0_i32_18 : i32 to vector<128x8xi32>
    %37 = arith.cmpi ne, %35, %36 : vector<128x8xi32>
    %c0_i32_19 = arith.constant 0 : i32
    %38 = vector.broadcast %c0_i32_19 : i32 to vector<128x8xi32>
    %39 = arith.cmpi slt, %35, %38 : vector<128x8xi32>
    %c0_i32_20 = arith.constant 0 : i32
    %40 = arith.cmpi slt, %33, %c0_i32_20 : i32
    %41 = vector.broadcast %40 : i1 to vector<128x8xi1>
    %42 = vector.broadcast %41 : vector<128x8xi1> to vector<128x8xi1>
    %43 = arith.xori %39, %42 : vector<128x8xi1>
    %44 = arith.andi %43, %37 : vector<128x8xi1>
    %45 = vector.broadcast %33 : i32 to vector<128x8xi32>
    %46 = arith.addi %35, %45 : vector<128x8xi32>
    %47 = arith.select %44, %46, %35 : vector<128x8xi1>, vector<128x8xi32>
    %48 = tpu.iota {dimensions = array<i32: 1>} : vector<128x8xi32>
    %49 = arith.cmpi eq, %47, %48 : vector<128x8xi32>
    %50 = arith.extui %49 : vector<128x8xi1> to vector<128x8xi32>
    %51 = arith.sitofp %50 : vector<128x8xi32> to vector<128x8xf32>
    %cst_21 = arith.constant dense<0.000000e+00> : vector<128xf32>
    %52 = vector.multi_reduction <add>, %27, %cst_21 [0] : vector<16x128xf32> to vector<128xf32>
    %53 = vector.shape_cast %52 : vector<128xf32> to vector<1x128xf32>
    %cst_22 = arith.constant dense<0.000000e+00> : vector<1x8xf32>
    %54 = tpu.matmul %53, %51, %cst_22 {dimension_numbers = #tpu.dot_dimension_numbers<[1], [0], [0], [1], [0, 0, 1, 1], [], []>} : vector<1x128xf32>, vector<128x8xf32>, vector<1x8xf32> -> vector<1x8xf32>
    %cst_23 = arith.constant 3.906250e-03 : f32
    %55 = vector.broadcast %cst_23 : f32 to vector<1x8xf32>
    %56 = arith.mulf %54, %55 : vector<1x8xf32>
    %57 = tpu.iota {dimensions = array<i32: 0>} : vector<8x128xi32>
    %58 = tpu.iota {dimensions = array<i32: 1>} : vector<8x128xi32>
    %c8_i32_24 = arith.constant 8 : i32
    %c0_i32_25 = arith.constant 0 : i32
    %59 = arith.cmpi eq, %c8_i32_24, %c0_i32_25 : i32
    %c1_i32_26 = arith.constant 1 : i32
    %60 = arith.select %59, %c1_i32_26, %c8_i32_24 : i32
    %61 = vector.broadcast %60 : i32 to vector<8x128xi32>
    %62 = arith.remsi %58, %61 : vector<8x128xi32>
    %c0_i32_27 = arith.constant 0 : i32
    %63 = vector.broadcast %c0_i32_27 : i32 to vector<8x128xi32>
    %64 = arith.cmpi ne, %62, %63 : vector<8x128xi32>
    %c0_i32_28 = arith.constant 0 : i32
    %65 = vector.broadcast %c0_i32_28 : i32 to vector<8x128xi32>
    %66 = arith.cmpi slt, %62, %65 : vector<8x128xi32>
    %c0_i32_29 = arith.constant 0 : i32
    %67 = arith.cmpi slt, %60, %c0_i32_29 : i32
    %68 = vector.broadcast %67 : i1 to vector<8x128xi1>
    %69 = vector.broadcast %68 : vector<8x128xi1> to vector<8x128xi1>
    %70 = arith.xori %66, %69 : vector<8x128xi1>
    %71 = arith.andi %70, %64 : vector<8x128xi1>
    %72 = vector.broadcast %60 : i32 to vector<8x128xi32>
    %73 = arith.addi %62, %72 : vector<8x128xi32>
    %74 = arith.select %71, %73, %62 : vector<8x128xi1>, vector<8x128xi32>
    %75 = arith.cmpi eq, %74, %57 : vector<8x128xi32>
    %76 = arith.extui %75 : vector<8x128xi1> to vector<8x128xi32>
    %77 = arith.sitofp %76 : vector<8x128xi32> to vector<8x128xf32>
    %cst_30 = arith.constant dense<0.000000e+00> : vector<1x128xf32>
    %78 = tpu.matmul %56, %77, %cst_30 {dimension_numbers = #tpu.dot_dimension_numbers<[1], [0], [0], [1], [0, 0, 1, 1], [], []>} : vector<1x8xf32>, vector<8x128xf32>, vector<1x128xf32> -> vector<1x128xf32>
    %79 = vector.broadcast %78 : vector<1x128xf32> to vector<16x128xf32>
    %80 = arith.subf %27, %79 : vector<16x128xf32>
    %81 = arith.mulf %80, %80 : vector<16x128xf32>
    %cst_31 = arith.constant dense<0.000000e+00> : vector<128xf32>
    %82 = vector.multi_reduction <add>, %81, %cst_31 [0] : vector<16x128xf32> to vector<128xf32>
    %83 = vector.shape_cast %82 : vector<128xf32> to vector<1x128xf32>
    %cst_32 = arith.constant dense<0.000000e+00> : vector<1x8xf32>
    %84 = tpu.matmul %83, %51, %cst_32 {dimension_numbers = #tpu.dot_dimension_numbers<[1], [0], [0], [1], [0, 0, 1, 1], [], []>} : vector<1x128xf32>, vector<128x8xf32>, vector<1x8xf32> -> vector<1x8xf32>
    %c0_33 = arith.constant 0 : index
    %c0_34 = arith.constant 0 : index
    %c0_35 = arith.constant 0 : index
    %85 = vector.load %arg4[%c0_33, %c0_34, %c0_35] : memref<1x1x8xf32, #tpu.memory_space<vmem>>, vector<1x1x8xf32>
    %86 = vector.shape_cast %85 : vector<1x1x8xf32> to vector<1x8xf32>
    %87 = vector.shape_cast %54 : vector<1x8xf32> to vector<1x1x8xf32>
    tpu.vector_store %arg4[%c0_33, %c0_34, %c0_35], %87 {strides = array<i32>} : memref<1x1x8xf32, #tpu.memory_space<vmem>>, vector<1x1x8xf32>,
    %c0_36 = arith.constant 0 : index
    %c0_37 = arith.constant 0 : index
    %c0_38 = arith.constant 0 : index
    %88 = vector.load %arg5[%c0_36, %c0_37, %c0_38] : memref<1x1x8xf32, #tpu.memory_space<vmem>>, vector<1x1x8xf32>
    %89 = vector.shape_cast %88 : vector<1x1x8xf32> to vector<1x8xf32>
    %90 = vector.shape_cast %84 : vector<1x8xf32> to vector<1x1x8xf32>
    tpu.vector_store %arg5[%c0_36, %c0_37, %c0_38], %90 {strides = array<i32>} : memref<1x1x8xf32, #tpu.memory_space<vmem>>, vector<1x1x8xf32>,
    return
  }
  func.func @transform_0(%arg0: i32) -> (i32, i32, i32) {
    %c0_i32 = arith.constant 0 : i32
    %c0_i32_0 = arith.constant 0 : i32
    %c0_i32_1 = arith.constant 0 : i32
    return %arg0, %c0_i32, %c0_i32_0 : i32, i32, i32
  }
  func.func @transform_1(%arg0: i32) -> (i32, i32, i32) {
    %c0_i32 = arith.constant 0 : i32
    %c0_i32_0 = arith.constant 0 : i32
    %c0_i32_1 = arith.constant 0 : i32
    %c0_i32_2 = arith.constant 0 : i32
    return %c0_i32, %c0_i32_0, %c0_i32_1 : i32, i32, i32
  }
  func.func @transform_2(%arg0: i32) -> (i32, i32, i32) {
    %c0_i32 = arith.constant 0 : i32
    %c0_i32_0 = arith.constant 0 : i32
    %c0_i32_1 = arith.constant 0 : i32
    return %arg0, %c0_i32, %c0_i32_0 : i32, i32, i32
  }
  func.func @transform_3(%arg0: i32) -> (i32, i32, i32) {
    %c0_i32 = arith.constant 0 : i32
    %c0_i32_0 = arith.constant 0 : i32
    %c0_i32_1 = arith.constant 0 : i32
    return %arg0, %c0_i32, %c0_i32_0 : i32, i32, i32
  }
  func.func @transform_4(%arg0: i32) -> (i32, i32, i32) {
    %c0_i32 = arith.constant 0 : i32
    %c0_i32_0 = arith.constant 0 : i32
    %c0_i32_1 = arith.constant 0 : i32
    return %arg0, %c0_i32, %c0_i32_0 : i32, i32, i32
  }
}

module attributes {stable_mosaic.version = 11 : i64} {
  func.func @_conv2_kernel(%arg0: i32, %arg1: memref<1x16x128xf32, #tpu.memory_space<vmem>>, %arg2: memref<1x8xf32, #tpu.memory_space<vmem>>, %arg3: memref<1x8xf32, #tpu.memory_space<vmem>>, %arg4: memref<3x128x128xf32, #tpu.memory_space<vmem>>, %arg5: memref<1x16x128xf32, #tpu.memory_space<vmem>>, %arg6: memref<1x1x8xf32, #tpu.memory_space<vmem>>, %arg7: memref<1x1x8xf32, #tpu.memory_space<vmem>>) attributes {dimension_semantics = [#tpu.dimension_semantics<parallel>], iteration_bounds = array<i64: 2>, scalar_prefetch = 0 : i64, scratch_operands = 0 : i64, tpu.core_type = #tpu.core_type<tc>, window_params = [{transform_indices = @transform_0, window_bounds = array<i64: 1, 16, 128>}, {pipeline_mode = #tpu.pipeline_mode<synchronous>, transform_indices = @transform_1, window_bounds = array<i64: 1, 8>}, {pipeline_mode = #tpu.pipeline_mode<synchronous>, transform_indices = @transform_2, window_bounds = array<i64: 1, 8>}, {pipeline_mode = #tpu.pipeline_mode<synchronous>, transform_indices = @transform_3, window_bounds = array<i64: 3, 128, 128>}, {transform_indices = @transform_4, window_bounds = array<i64: 1, 16, 128>}, {transform_indices = @transform_5, window_bounds = array<i64: 1, 1, 8>}, {transform_indices = @transform_6, window_bounds = array<i64: 1, 1, 8>}]} {
    %0 = tpu.iota {dimensions = array<i32: 0>} : vector<8x128xi32>
    %1 = tpu.iota {dimensions = array<i32: 1>} : vector<8x128xi32>
    %c8_i32 = arith.constant 8 : i32
    %c0_i32 = arith.constant 0 : i32
    %2 = arith.cmpi eq, %c8_i32, %c0_i32 : i32
    %c1_i32 = arith.constant 1 : i32
    %3 = arith.select %2, %c1_i32, %c8_i32 : i32
    %4 = vector.broadcast %3 : i32 to vector<8x128xi32>
    %5 = arith.remsi %1, %4 : vector<8x128xi32>
    %c0_i32_0 = arith.constant 0 : i32
    %6 = vector.broadcast %c0_i32_0 : i32 to vector<8x128xi32>
    %7 = arith.cmpi ne, %5, %6 : vector<8x128xi32>
    %c0_i32_1 = arith.constant 0 : i32
    %8 = vector.broadcast %c0_i32_1 : i32 to vector<8x128xi32>
    %9 = arith.cmpi slt, %5, %8 : vector<8x128xi32>
    %c0_i32_2 = arith.constant 0 : i32
    %10 = arith.cmpi slt, %3, %c0_i32_2 : i32
    %11 = vector.broadcast %10 : i1 to vector<8x128xi1>
    %12 = vector.broadcast %11 : vector<8x128xi1> to vector<8x128xi1>
    %13 = arith.xori %9, %12 : vector<8x128xi1>
    %14 = arith.andi %13, %7 : vector<8x128xi1>
    %15 = vector.broadcast %3 : i32 to vector<8x128xi32>
    %16 = arith.addi %5, %15 : vector<8x128xi32>
    %17 = arith.select %14, %16, %5 : vector<8x128xi1>, vector<8x128xi32>
    %18 = arith.cmpi eq, %17, %0 : vector<8x128xi32>
    %19 = arith.extui %18 : vector<8x128xi1> to vector<8x128xi32>
    %20 = arith.sitofp %19 : vector<8x128xi32> to vector<8x128xf32>
    %c0 = arith.constant 0 : index
    %c0_3 = arith.constant 0 : index
    %21 = vector.load %arg2[%c0, %c0_3] : memref<1x8xf32, #tpu.memory_space<vmem>>, vector<1x8xf32>
    %cst = arith.constant dense<0.000000e+00> : vector<1x128xf32>
    %22 = tpu.matmul %21, %20, %cst {dimension_numbers = #tpu.dot_dimension_numbers<[1], [0], [0], [1], [0, 0, 1, 1], [], []>} : vector<1x8xf32>, vector<8x128xf32>, vector<1x128xf32> -> vector<1x128xf32>
    %c0_4 = arith.constant 0 : index
    %c0_5 = arith.constant 0 : index
    %23 = vector.load %arg3[%c0_4, %c0_5] : memref<1x8xf32, #tpu.memory_space<vmem>>, vector<1x8xf32>
    %cst_6 = arith.constant dense<0.000000e+00> : vector<1x128xf32>
    %24 = tpu.matmul %23, %20, %cst_6 {dimension_numbers = #tpu.dot_dimension_numbers<[1], [0], [0], [1], [0, 0, 1, 1], [], []>} : vector<1x8xf32>, vector<8x128xf32>, vector<1x128xf32> -> vector<1x128xf32>
    %c0_7 = arith.constant 0 : index
    %c0_8 = arith.constant 0 : index
    %c0_9 = arith.constant 0 : index
    %25 = vector.load %arg1[%c0_7, %c0_8, %c0_9] : memref<1x16x128xf32, #tpu.memory_space<vmem>>, vector<1x16x128xf32>
    %26 = vector.shape_cast %25 : vector<1x16x128xf32> to vector<16x128xf32>
    %27 = vector.broadcast %22 : vector<1x128xf32> to vector<16x128xf32>
    %28 = arith.mulf %26, %27 : vector<16x128xf32>
    %29 = vector.broadcast %24 : vector<1x128xf32> to vector<16x128xf32>
    %30 = arith.addf %28, %29 : vector<16x128xf32>
    %cst_10 = arith.constant 0.000000e+00 : f32
    %31 = vector.broadcast %cst_10 : f32 to vector<16x128xf32>
    %32 = arith.maximumf %30, %31 : vector<16x128xf32>
    %33 = tpu.iota {dimensions = array<i32: 0>} : vector<16x1xi32>
    %c1 = arith.constant 1 : index
    %c0_11 = arith.constant 0 : index
    %c0_12 = arith.constant 0 : index
    %34 = vector.load %arg4[%c1, %c0_11, %c0_12] : memref<3x128x128xf32, #tpu.memory_space<vmem>>, vector<1x128x128xf32>
    %35 = vector.shape_cast %34 : vector<1x128x128xf32> to vector<128x128xf32>
    %cst_13 = arith.constant dense<0.000000e+00> : vector<16x128xf32>
    %36 = tpu.matmul %32, %35, %cst_13 {dimension_numbers = #tpu.dot_dimension_numbers<[1], [0], [0], [1], [0, 0, 1, 1], [], []>} : vector<16x128xf32>, vector<128x128xf32>, vector<16x128xf32> -> vector<16x128xf32>
    %c1_i32_14 = arith.constant 1 : i32
    %37 = vector.broadcast %c1_i32_14 : i32 to vector<16x1xi32>
    %38 = arith.cmpi sge, %33, %37 : vector<16x1xi32>
    %c1_i32_15 = arith.constant 1 : i32
    %39 = tpu.dynamic_rotate %32 by %c1_i32_15 dim 0 : vector<16x128xf32>, i32 -> vector<16x128xf32>
    %cst_16 = arith.constant 0.000000e+00 : f32
    %40 = vector.shape_cast %38 : vector<16x1xi1> to vector<16x1xi1>
    %41 = vector.broadcast %40 : vector<16x1xi1> to vector<16x128xi1>
    %42 = vector.broadcast %cst_16 : f32 to vector<16x128xf32>
    %43 = arith.select %41, %39, %42 : vector<16x128xi1>, vector<16x128xf32>
    %c0_17 = arith.constant 0 : index
    %c0_18 = arith.constant 0 : index
    %c0_19 = arith.constant 0 : index
    %44 = vector.load %arg4[%c0_17, %c0_18, %c0_19] : memref<3x128x128xf32, #tpu.memory_space<vmem>>, vector<1x128x128xf32>
    %45 = vector.shape_cast %44 : vector<1x128x128xf32> to vector<128x128xf32>
    %cst_20 = arith.constant dense<0.000000e+00> : vector<16x128xf32>
    %46 = tpu.matmul %43, %45, %cst_20 {dimension_numbers = #tpu.dot_dimension_numbers<[1], [0], [0], [1], [0, 0, 1, 1], [], []>} : vector<16x128xf32>, vector<128x128xf32>, vector<16x128xf32> -> vector<16x128xf32>
    %47 = arith.addf %36, %46 : vector<16x128xf32>
    %c14_i32 = arith.constant 14 : i32
    %48 = vector.broadcast %c14_i32 : i32 to vector<16x1xi32>
    %49 = arith.cmpi sle, %33, %48 : vector<16x1xi32>
    %c15_i32 = arith.constant 15 : i32
    %50 = tpu.dynamic_rotate %32 by %c15_i32 dim 0 : vector<16x128xf32>, i32 -> vector<16x128xf32>
    %cst_21 = arith.constant 0.000000e+00 : f32
    %51 = vector.shape_cast %49 : vector<16x1xi1> to vector<16x1xi1>
    %52 = vector.broadcast %51 : vector<16x1xi1> to vector<16x128xi1>
    %53 = vector.broadcast %cst_21 : f32 to vector<16x128xf32>
    %54 = arith.select %52, %50, %53 : vector<16x128xi1>, vector<16x128xf32>
    %c2 = arith.constant 2 : index
    %c0_22 = arith.constant 0 : index
    %c0_23 = arith.constant 0 : index
    %55 = vector.load %arg4[%c2, %c0_22, %c0_23] : memref<3x128x128xf32, #tpu.memory_space<vmem>>, vector<1x128x128xf32>
    %56 = vector.shape_cast %55 : vector<1x128x128xf32> to vector<128x128xf32>
    %cst_24 = arith.constant dense<0.000000e+00> : vector<16x128xf32>
    %57 = tpu.matmul %54, %56, %cst_24 {dimension_numbers = #tpu.dot_dimension_numbers<[1], [0], [0], [1], [0, 0, 1, 1], [], []>} : vector<16x128xf32>, vector<128x128xf32>, vector<16x128xf32> -> vector<16x128xf32>
    %58 = arith.addf %47, %57 : vector<16x128xf32>
    %c0_25 = arith.constant 0 : index
    %c0_26 = arith.constant 0 : index
    %c0_27 = arith.constant 0 : index
    %59 = vector.load %arg5[%c0_25, %c0_26, %c0_27] : memref<1x16x128xf32, #tpu.memory_space<vmem>>, vector<1x16x128xf32>
    %60 = vector.shape_cast %59 : vector<1x16x128xf32> to vector<16x128xf32>
    %61 = vector.shape_cast %58 : vector<16x128xf32> to vector<1x16x128xf32>
    tpu.vector_store %arg5[%c0_25, %c0_26, %c0_27], %61 {strides = array<i32>} : memref<1x16x128xf32, #tpu.memory_space<vmem>>, vector<1x16x128xf32>,
    %62 = tpu.iota {dimensions = array<i32: 0>} : vector<128x8xi32>
    %c8_i32_28 = arith.constant 8 : i32
    %c0_i32_29 = arith.constant 0 : i32
    %63 = arith.cmpi eq, %c8_i32_28, %c0_i32_29 : i32
    %c1_i32_30 = arith.constant 1 : i32
    %64 = arith.select %63, %c1_i32_30, %c8_i32_28 : i32
    %65 = vector.broadcast %64 : i32 to vector<128x8xi32>
    %66 = arith.remsi %62, %65 : vector<128x8xi32>
    %c0_i32_31 = arith.constant 0 : i32
    %67 = vector.broadcast %c0_i32_31 : i32 to vector<128x8xi32>
    %68 = arith.cmpi ne, %66, %67 : vector<128x8xi32>
    %c0_i32_32 = arith.constant 0 : i32
    %69 = vector.broadcast %c0_i32_32 : i32 to vector<128x8xi32>
    %70 = arith.cmpi slt, %66, %69 : vector<128x8xi32>
    %c0_i32_33 = arith.constant 0 : i32
    %71 = arith.cmpi slt, %64, %c0_i32_33 : i32
    %72 = vector.broadcast %71 : i1 to vector<128x8xi1>
    %73 = vector.broadcast %72 : vector<128x8xi1> to vector<128x8xi1>
    %74 = arith.xori %70, %73 : vector<128x8xi1>
    %75 = arith.andi %74, %68 : vector<128x8xi1>
    %76 = vector.broadcast %64 : i32 to vector<128x8xi32>
    %77 = arith.addi %66, %76 : vector<128x8xi32>
    %78 = arith.select %75, %77, %66 : vector<128x8xi1>, vector<128x8xi32>
    %79 = tpu.iota {dimensions = array<i32: 1>} : vector<128x8xi32>
    %80 = arith.cmpi eq, %78, %79 : vector<128x8xi32>
    %81 = arith.extui %80 : vector<128x8xi1> to vector<128x8xi32>
    %82 = arith.sitofp %81 : vector<128x8xi32> to vector<128x8xf32>
    %cst_34 = arith.constant dense<0.000000e+00> : vector<128xf32>
    %83 = vector.multi_reduction <add>, %58, %cst_34 [0] : vector<16x128xf32> to vector<128xf32>
    %84 = vector.shape_cast %83 : vector<128xf32> to vector<1x128xf32>
    %cst_35 = arith.constant dense<0.000000e+00> : vector<1x8xf32>
    %85 = tpu.matmul %84, %82, %cst_35 {dimension_numbers = #tpu.dot_dimension_numbers<[1], [0], [0], [1], [0, 0, 1, 1], [], []>} : vector<1x128xf32>, vector<128x8xf32>, vector<1x8xf32> -> vector<1x8xf32>
    %cst_36 = arith.constant 3.906250e-03 : f32
    %86 = vector.broadcast %cst_36 : f32 to vector<1x8xf32>
    %87 = arith.mulf %85, %86 : vector<1x8xf32>
    %88 = tpu.iota {dimensions = array<i32: 0>} : vector<8x128xi32>
    %89 = tpu.iota {dimensions = array<i32: 1>} : vector<8x128xi32>
    %c8_i32_37 = arith.constant 8 : i32
    %c0_i32_38 = arith.constant 0 : i32
    %90 = arith.cmpi eq, %c8_i32_37, %c0_i32_38 : i32
    %c1_i32_39 = arith.constant 1 : i32
    %91 = arith.select %90, %c1_i32_39, %c8_i32_37 : i32
    %92 = vector.broadcast %91 : i32 to vector<8x128xi32>
    %93 = arith.remsi %89, %92 : vector<8x128xi32>
    %c0_i32_40 = arith.constant 0 : i32
    %94 = vector.broadcast %c0_i32_40 : i32 to vector<8x128xi32>
    %95 = arith.cmpi ne, %93, %94 : vector<8x128xi32>
    %c0_i32_41 = arith.constant 0 : i32
    %96 = vector.broadcast %c0_i32_41 : i32 to vector<8x128xi32>
    %97 = arith.cmpi slt, %93, %96 : vector<8x128xi32>
    %c0_i32_42 = arith.constant 0 : i32
    %98 = arith.cmpi slt, %91, %c0_i32_42 : i32
    %99 = vector.broadcast %98 : i1 to vector<8x128xi1>
    %100 = vector.broadcast %99 : vector<8x128xi1> to vector<8x128xi1>
    %101 = arith.xori %97, %100 : vector<8x128xi1>
    %102 = arith.andi %101, %95 : vector<8x128xi1>
    %103 = vector.broadcast %91 : i32 to vector<8x128xi32>
    %104 = arith.addi %93, %103 : vector<8x128xi32>
    %105 = arith.select %102, %104, %93 : vector<8x128xi1>, vector<8x128xi32>
    %106 = arith.cmpi eq, %105, %88 : vector<8x128xi32>
    %107 = arith.extui %106 : vector<8x128xi1> to vector<8x128xi32>
    %108 = arith.sitofp %107 : vector<8x128xi32> to vector<8x128xf32>
    %cst_43 = arith.constant dense<0.000000e+00> : vector<1x128xf32>
    %109 = tpu.matmul %87, %108, %cst_43 {dimension_numbers = #tpu.dot_dimension_numbers<[1], [0], [0], [1], [0, 0, 1, 1], [], []>} : vector<1x8xf32>, vector<8x128xf32>, vector<1x128xf32> -> vector<1x128xf32>
    %110 = vector.broadcast %109 : vector<1x128xf32> to vector<16x128xf32>
    %111 = arith.subf %58, %110 : vector<16x128xf32>
    %112 = arith.mulf %111, %111 : vector<16x128xf32>
    %cst_44 = arith.constant dense<0.000000e+00> : vector<128xf32>
    %113 = vector.multi_reduction <add>, %112, %cst_44 [0] : vector<16x128xf32> to vector<128xf32>
    %114 = vector.shape_cast %113 : vector<128xf32> to vector<1x128xf32>
    %cst_45 = arith.constant dense<0.000000e+00> : vector<1x8xf32>
    %115 = tpu.matmul %114, %82, %cst_45 {dimension_numbers = #tpu.dot_dimension_numbers<[1], [0], [0], [1], [0, 0, 1, 1], [], []>} : vector<1x128xf32>, vector<128x8xf32>, vector<1x8xf32> -> vector<1x8xf32>
    %c0_46 = arith.constant 0 : index
    %c0_47 = arith.constant 0 : index
    %c0_48 = arith.constant 0 : index
    %116 = vector.load %arg6[%c0_46, %c0_47, %c0_48] : memref<1x1x8xf32, #tpu.memory_space<vmem>>, vector<1x1x8xf32>
    %117 = vector.shape_cast %116 : vector<1x1x8xf32> to vector<1x8xf32>
    %118 = vector.shape_cast %85 : vector<1x8xf32> to vector<1x1x8xf32>
    tpu.vector_store %arg6[%c0_46, %c0_47, %c0_48], %118 {strides = array<i32>} : memref<1x1x8xf32, #tpu.memory_space<vmem>>, vector<1x1x8xf32>,
    %c0_49 = arith.constant 0 : index
    %c0_50 = arith.constant 0 : index
    %c0_51 = arith.constant 0 : index
    %119 = vector.load %arg7[%c0_49, %c0_50, %c0_51] : memref<1x1x8xf32, #tpu.memory_space<vmem>>, vector<1x1x8xf32>
    %120 = vector.shape_cast %119 : vector<1x1x8xf32> to vector<1x8xf32>
    %121 = vector.shape_cast %115 : vector<1x8xf32> to vector<1x1x8xf32>
    tpu.vector_store %arg7[%c0_49, %c0_50, %c0_51], %121 {strides = array<i32>} : memref<1x1x8xf32, #tpu.memory_space<vmem>>, vector<1x1x8xf32>,
    return
  }
  func.func @transform_0(%arg0: i32) -> (i32, i32, i32) {
    %c0_i32 = arith.constant 0 : i32
    %c0_i32_0 = arith.constant 0 : i32
    %c0_i32_1 = arith.constant 0 : i32
    return %arg0, %c0_i32, %c0_i32_0 : i32, i32, i32
  }
  func.func @transform_1(%arg0: i32) -> (i32, i32) {
    %c0_i32 = arith.constant 0 : i32
    %c0_i32_0 = arith.constant 0 : i32
    %c0_i32_1 = arith.constant 0 : i32
    return %c0_i32, %c0_i32_0 : i32, i32
  }
  func.func @transform_2(%arg0: i32) -> (i32, i32) {
    %c0_i32 = arith.constant 0 : i32
    %c0_i32_0 = arith.constant 0 : i32
    %c0_i32_1 = arith.constant 0 : i32
    return %c0_i32, %c0_i32_0 : i32, i32
  }
  func.func @transform_3(%arg0: i32) -> (i32, i32, i32) {
    %c0_i32 = arith.constant 0 : i32
    %c0_i32_0 = arith.constant 0 : i32
    %c0_i32_1 = arith.constant 0 : i32
    %c0_i32_2 = arith.constant 0 : i32
    return %c0_i32, %c0_i32_0, %c0_i32_1 : i32, i32, i32
  }
  func.func @transform_4(%arg0: i32) -> (i32, i32, i32) {
    %c0_i32 = arith.constant 0 : i32
    %c0_i32_0 = arith.constant 0 : i32
    %c0_i32_1 = arith.constant 0 : i32
    return %arg0, %c0_i32, %c0_i32_0 : i32, i32, i32
  }
  func.func @transform_5(%arg0: i32) -> (i32, i32, i32) {
    %c0_i32 = arith.constant 0 : i32
    %c0_i32_0 = arith.constant 0 : i32
    %c0_i32_1 = arith.constant 0 : i32
    return %arg0, %c0_i32, %c0_i32_0 : i32, i32, i32
  }
  func.func @transform_6(%arg0: i32) -> (i32, i32, i32) {
    %c0_i32 = arith.constant 0 : i32
    %c0_i32_0 = arith.constant 0 : i32
    %c0_i32_1 = arith.constant 0 : i32
    return %arg0, %c0_i32, %c0_i32_0 : i32, i32, i32
  }
}

module attributes {stable_mosaic.version = 11 : i64} {
  func.func @_bn_relu_kernel(%arg0: i32, %arg1: memref<1x16x128xf32, #tpu.memory_space<vmem>>, %arg2: memref<1x8xf32, #tpu.memory_space<vmem>>, %arg3: memref<1x8xf32, #tpu.memory_space<vmem>>, %arg4: memref<1x16x128xf32, #tpu.memory_space<vmem>>) attributes {dimension_semantics = [#tpu.dimension_semantics<parallel>], iteration_bounds = array<i64: 2>, scalar_prefetch = 0 : i64, scratch_operands = 0 : i64, tpu.core_type = #tpu.core_type<tc>, window_params = [{transform_indices = @transform_0, window_bounds = array<i64: 1, 16, 128>}, {pipeline_mode = #tpu.pipeline_mode<synchronous>, transform_indices = @transform_1, window_bounds = array<i64: 1, 8>}, {pipeline_mode = #tpu.pipeline_mode<synchronous>, transform_indices = @transform_2, window_bounds = array<i64: 1, 8>}, {transform_indices = @transform_3, window_bounds = array<i64: 1, 16, 128>}]} {
    %0 = tpu.iota {dimensions = array<i32: 0>} : vector<8x128xi32>
    %1 = tpu.iota {dimensions = array<i32: 1>} : vector<8x128xi32>
    %c8_i32 = arith.constant 8 : i32
    %c0_i32 = arith.constant 0 : i32
    %2 = arith.cmpi eq, %c8_i32, %c0_i32 : i32
    %c1_i32 = arith.constant 1 : i32
    %3 = arith.select %2, %c1_i32, %c8_i32 : i32
    %4 = vector.broadcast %3 : i32 to vector<8x128xi32>
    %5 = arith.remsi %1, %4 : vector<8x128xi32>
    %c0_i32_0 = arith.constant 0 : i32
    %6 = vector.broadcast %c0_i32_0 : i32 to vector<8x128xi32>
    %7 = arith.cmpi ne, %5, %6 : vector<8x128xi32>
    %c0_i32_1 = arith.constant 0 : i32
    %8 = vector.broadcast %c0_i32_1 : i32 to vector<8x128xi32>
    %9 = arith.cmpi slt, %5, %8 : vector<8x128xi32>
    %c0_i32_2 = arith.constant 0 : i32
    %10 = arith.cmpi slt, %3, %c0_i32_2 : i32
    %11 = vector.broadcast %10 : i1 to vector<8x128xi1>
    %12 = vector.broadcast %11 : vector<8x128xi1> to vector<8x128xi1>
    %13 = arith.xori %9, %12 : vector<8x128xi1>
    %14 = arith.andi %13, %7 : vector<8x128xi1>
    %15 = vector.broadcast %3 : i32 to vector<8x128xi32>
    %16 = arith.addi %5, %15 : vector<8x128xi32>
    %17 = arith.select %14, %16, %5 : vector<8x128xi1>, vector<8x128xi32>
    %18 = arith.cmpi eq, %17, %0 : vector<8x128xi32>
    %19 = arith.extui %18 : vector<8x128xi1> to vector<8x128xi32>
    %20 = arith.sitofp %19 : vector<8x128xi32> to vector<8x128xf32>
    %c0 = arith.constant 0 : index
    %c0_3 = arith.constant 0 : index
    %21 = vector.load %arg2[%c0, %c0_3] : memref<1x8xf32, #tpu.memory_space<vmem>>, vector<1x8xf32>
    %cst = arith.constant dense<0.000000e+00> : vector<1x128xf32>
    %22 = tpu.matmul %21, %20, %cst {dimension_numbers = #tpu.dot_dimension_numbers<[1], [0], [0], [1], [0, 0, 1, 1], [], []>} : vector<1x8xf32>, vector<8x128xf32>, vector<1x128xf32> -> vector<1x128xf32>
    %c0_4 = arith.constant 0 : index
    %c0_5 = arith.constant 0 : index
    %23 = vector.load %arg3[%c0_4, %c0_5] : memref<1x8xf32, #tpu.memory_space<vmem>>, vector<1x8xf32>
    %cst_6 = arith.constant dense<0.000000e+00> : vector<1x128xf32>
    %24 = tpu.matmul %23, %20, %cst_6 {dimension_numbers = #tpu.dot_dimension_numbers<[1], [0], [0], [1], [0, 0, 1, 1], [], []>} : vector<1x8xf32>, vector<8x128xf32>, vector<1x128xf32> -> vector<1x128xf32>
    %c0_7 = arith.constant 0 : index
    %c0_8 = arith.constant 0 : index
    %c0_9 = arith.constant 0 : index
    %25 = vector.load %arg1[%c0_7, %c0_8, %c0_9] : memref<1x16x128xf32, #tpu.memory_space<vmem>>, vector<1x16x128xf32>
    %26 = vector.shape_cast %25 : vector<1x16x128xf32> to vector<16x128xf32>
    %27 = vector.broadcast %22 : vector<1x128xf32> to vector<16x128xf32>
    %28 = arith.mulf %26, %27 : vector<16x128xf32>
    %29 = vector.broadcast %24 : vector<1x128xf32> to vector<16x128xf32>
    %30 = arith.addf %28, %29 : vector<16x128xf32>
    %cst_10 = arith.constant 0.000000e+00 : f32
    %31 = vector.broadcast %cst_10 : f32 to vector<16x128xf32>
    %32 = arith.maximumf %30, %31 : vector<16x128xf32>
    %c0_11 = arith.constant 0 : index
    %c0_12 = arith.constant 0 : index
    %c0_13 = arith.constant 0 : index
    %33 = vector.load %arg4[%c0_11, %c0_12, %c0_13] : memref<1x16x128xf32, #tpu.memory_space<vmem>>, vector<1x16x128xf32>
    %34 = vector.shape_cast %33 : vector<1x16x128xf32> to vector<16x128xf32>
    %35 = vector.shape_cast %32 : vector<16x128xf32> to vector<1x16x128xf32>
    tpu.vector_store %arg4[%c0_11, %c0_12, %c0_13], %35 {strides = array<i32>} : memref<1x16x128xf32, #tpu.memory_space<vmem>>, vector<1x16x128xf32>,
    return
  }
  func.func @transform_0(%arg0: i32) -> (i32, i32, i32) {
    %c0_i32 = arith.constant 0 : i32
    %c0_i32_0 = arith.constant 0 : i32
    %c0_i32_1 = arith.constant 0 : i32
    return %arg0, %c0_i32, %c0_i32_0 : i32, i32, i32
  }
  func.func @transform_1(%arg0: i32) -> (i32, i32) {
    %c0_i32 = arith.constant 0 : i32
    %c0_i32_0 = arith.constant 0 : i32
    %c0_i32_1 = arith.constant 0 : i32
    return %c0_i32, %c0_i32_0 : i32, i32
  }
  func.func @transform_2(%arg0: i32) -> (i32, i32) {
    %c0_i32 = arith.constant 0 : i32
    %c0_i32_0 = arith.constant 0 : i32
    %c0_i32_1 = arith.constant 0 : i32
    return %c0_i32, %c0_i32_0 : i32, i32
  }
  func.func @transform_3(%arg0: i32) -> (i32, i32, i32) {
    %c0_i32 = arith.constant 0 : i32
    %c0_i32_0 = arith.constant 0 : i32
    %c0_i32_1 = arith.constant 0 : i32
    return %arg0, %c0_i32, %c0_i32_0 : i32, i32, i32
  }
}

</mosaic_0001>

<bundles_post_ra>
// kernel: block_forward.3
= control target key start
LH: loop header
LB: loop body
LE: loop exit
PB: predicated region body
PF: predicated region fallthrough
CT: control target
= control target key end

     0   :  { %s956_s15 = smov 0   ;;  %s1152_s0 = inlined_call_operand.vmem [shape: f32[2,16,64], index: 0, kind: input, shape index: {}]   ;;  %s1153_s1 = inlined_call_operand.vmem [shape: f32[3,64,128], index: 1, kind: input, shape index: {}]   ;;  %s1154_s2 = inlined_call_operand.vmem [shape: f32[2,16,128], index: 2, kind: output, shape index: {0}]   ;;  %s1155_s3 = inlined_call_operand.vmem [shape: f32[2,1,8], index: 3, kind: output, shape index: {1}]   ;;  %s1156_s4 = inlined_call_operand.vmem [shape: f32[2,1,8], index: 4, kind: output, shape index: {2}]  }
   0x1 LB: > { %s827_s16 = sadd.s32 4294967295, %s928_s15   ;;  %p831_p0 = scmp.ge.s32.totalorder %s928_s15, 1  ;;  %s928_s15 = sphi %s956_s15, %s15_s15  }
   0x2   : > { %p167_p1 = scmp.lt.s32.totalorder %s928_s15, 3 }
   0x4   : > { %p168_p2 = pnand %p831_p0, %p167_p1 }
   0x5   : > { %p199_p3 = scmp.lt.s32.totalorder (!%p168_p2), %s827_s16, 1 }
   0x6   : > { %171 = sbr.rel (%p168_p2) target bundleno = 606 (0x25e), region = 28 }
   0xb   : > { %v843_v0 = vld [vmem:[%s1153_s1 + $0x78] sm:$0xff]  ;;  %v842_v1 = vld [vmem:[%s1153_s1 + $0x70] sm:$0xff]  ;;  %v217_v2 = vlaneseq  ;;  %v841_v5 = vld [vmem:[%s1153_s1 + $0x68] sm:$0xff]  ;;  %s1158_s16 = smov (!%p199_p3, %s827_s16), 1  ;;  %vm250_vm2 = vcmask 523264   ;;  %v930_v45 = vmov 1.0  }
   0xc   : > { %294 = vmatpush.msra.mxu2 %v843_v0  ;;  %v249_v3 = vld [vmem:[%s1153_s1 + $0x38] sm:$0xff]  ;;  %v248_v4 = vld [vmem:[%s1153_s1 + $0x30] sm:$0xff]  ;;  %v247_v6 = vld [vmem:[%s1153_s1 + $0x28] sm:$0xff]  ;;  %s911_s5 = sshll.u32 %s1158_s16, 4  ;;  %s214_s29 = scalar_lea.vmem %s1156_s4, %s1158_s16 }
   0xd   : > { %265 = vmatpush.msra.mxu0 %v249_v3  ;;  %v840_v7 = vld [vmem:[%s1153_s1 + $0x60] sm:$0xff]  ;;  %v989_v8 = vshrl.u32 %v217_v2, 7  ;;  %s203_s10 = scalar_lea.vmem %s1152_s0, %s911_s5  ;;  %v839_v10 = vld [vmem:[%s1153_s1 + $0x58] sm:$0xff]  ;;  %v838_v16 = vld [vmem:[%s1153_s1 + $0x50] sm:$0xff]  ;;  %v1066_v41 = vand.u32 127, %v217_v2  ;;  %s208_s24 = scalar_lea.vmem %s1154_s2, %s911_s5 }
   0xe   : > { %295 = vmatpush.msra.mxu2 %v842_v1  ;;  %v246_v9 = vld [vmem:[%s1153_s1 + $0x20] sm:$0xff]  ;;  %v216_v12 = vld [vmem:[%s203_s10 + $0x8] sm:$0xff]  ;;  %v245_v13 = vld [vmem:[%s1153_s1 + $0x18] sm:$0xff]  ;;  %s211_s5 = scalar_lea.vmem %s1155_s3, %s1158_s16 }
   0xf   : > { %266 = vmatpush.msra.mxu0 %v248_v4  ;;  %v215_v11 = vld [vmem:[%s203_s10] sm:$0xff]  ;;  %v232_v15 = vrot.slane %v216_v12, 7  ;;  %vm233_vm0 = vcmp.lt.s32.totalorder %v989_v8, 1  ;;  %v244_v17 = vld [vmem:[%s1153_s1 + $0x10] sm:$0xff]  ;;  %v837_v18 = vld [vmem:[%s1153_s1 + $0x48] sm:$0xff]  ;;  %vm229_vm1 = vcmp.ge.s32.totalorder %v989_v8, 1 }
  0x10   : > { %296 = vmatpush.msra.mxu2 %v841_v5  ;;  %v231_v14 = vrot.slane %v215_v11, 7  ;;  %v243_v19 = vld [vmem:[%s1153_s1 + $0x8] sm:$0xff]  ;;  %v836_v21 = vld [vmem:[%s1153_s1 + $0x40] sm:$0xff]  ;;  %v855_v23 = vld [vmem:[%s1153_s1 + $0xb8] sm:$0xff]  ;;  %v311_v31 = vrot.slane %v215_v11, 1  ;;  %v312_v32 = vrot.slane %v216_v12, 1 }
  0x11   : > { %267 = vmatpush.msra.mxu0 %v247_v6  ;;  %v242_v22 = vld [vmem:[%s1153_s1] sm:$0xff]  ;;  %v854_v25 = vld [vmem:[%s1153_s1 + $0xb0] sm:$0xff]  ;;  %v853_v26 = vld [vmem:[%s1153_s1 + $0xa8] sm:$0xff]  ;;  %vm313_vm3 = vcmp.lt.s32.totalorder %v989_v8, 7  ;;  %v1059_v36 = vadd.s32 8, %v989_v8  ;;  %v377_v39 = vadd.s32 120, %v989_v8 }
  0x12   : > { %297 = vmatpush.msra.mxu2 %v840_v7  ;;  %v235_v20 = vsel %vm233_vm0, %v232_v15, %v231_v14  ;;  %v852_v27 = vld [vmem:[%s1153_s1 + $0xa0] sm:$0xff]  ;;  %v851_v28 = vld [vmem:[%s1153_s1 + $0x98] sm:$0xff]  ;;  %v234_v29 = vsel %vm233_vm0, %v231_v14, %v232_v15  ;;  %v850_v30 = vld [vmem:[%s1153_s1 + $0x90] sm:$0xff]  ;;  %v314_v35 = vsel %vm313_vm3, %v311_v31, %v312_v32  ;;  %v315_v37 = vsel %vm313_vm3, %v312_v32, %v311_v31 }
  0x13   : > { %268 = vmatpush.msra.mxu0 %v246_v9  ;;  %v240_v24 = vsel %vm229_vm1, %v235_v20, 0.0  ;;  %v849_v33 = vld [vmem:[%s1153_s1 + $0x88] sm:$0xff]  ;;  %v848_v34 = vld [vmem:[%s1153_s1 + $0x80] sm:$0xff]  ;;  %vm310_vm4 = vcmp.le.s32.totalorder %v1059_v36, 14  ;;  %v487_v40 = vand.u32 7, %v377_v39  ;;  %v376_v42 = vadd.s32 112, %v989_v8 }
  0x14   : > { %298 = vmatpush.msra.mxu2 %v839_v10  ;;  %v321_v38 = vsel %vm310_vm4, %v315_v37, 0.0  ;;  %v375_v44 = vadd.s32 104, %v989_v8  ;;  %v374_v47 = vadd.s32 96, %v989_v8  ;;  %v373_v49 = vadd.s32 88, %v989_v8 }
  0x15   : > { %269 = vmatpush.msra.mxu0 %v245_v13  ;;  %vm587_vm5 = vcmp.eq.s32.totalorder %v487_v40, %v1066_v41  ;;  %v480_v43 = vand.u32 7, %v376_v42  ;;  %v372_v51 = vadd.s32 80, %v989_v8  ;;  %v371_v53 = vadd.s32 72, %v989_v8 }
  0x16   : > { %299 = vmatpush.msra.mxu2 %v838_v16  ;;  %874 = vmatpush.msk.msra.mxu3 %vm587_vm5, %v930_v45  ;;  %v473_v46 = vand.u32 7, %v375_v44  ;;  %v466_v48 = vand.u32 7, %v374_v47  ;;  %v459_v50 = vand.u32 7, %v373_v49  ;;  %v370_v55 = vadd.s32 64, %v989_v8 }
  0x17   : > { %270 = vmatpush.msra.mxu0 %v244_v17  ;;  %893 = vmatpush.msk.msra.mxu1 %vm587_vm5, %v930_v45  ;;  %vm586_vm6 = vcmp.eq.s32.totalorder %v480_v43, %v1066_v41  ;;  %v452_v52 = vand.u32 7, %v372_v51  ;;  %v445_v54 = vand.u32 7, %v371_v53  ;;  %v369_v57 = vadd.s32 56, %v989_v8 }
  0x18   : > { %300 = vmatpush.msra.mxu2 %v837_v18  ;;  %875 = vmatpush.msk.msra.mxu3 %vm586_vm6, %v930_v45  ;;  %vm585_vm7 = vcmp.eq.s32.totalorder %v473_v46, %v1066_v41  ;;  %vm584_vm8 = vcmp.eq.s32.totalorder %v466_v48, %v1066_v41  ;;  %vm583_vm9 = vcmp.eq.s32.totalorder %v459_v50, %v1066_v41  ;;  %v438_v56 = vand.u32 7, %v370_v55 }
  0x19   : > { %271 = vmatpush.msra.mxu0 %v243_v19  ;;  %894 = vmatpush.msk.msra.mxu1 %vm586_vm6, %v930_v45  ;;  %vm582_vm10 = vcmp.eq.s32.totalorder %v452_v52, %v1066_v41  ;;  %vm581_vm11 = vcmp.eq.s32.totalorder %v445_v54, %v1066_v41  ;;  %v431_v58 = vand.u32 7, %v369_v57  ;;  %v368_v59 = vadd.s32 48, %v989_v8 }
  0x1a   : > { %301 = vmatpush.msra.mxu2 %v836_v21  ;;  %876 = vmatpush.msk.msra.mxu3 %vm585_vm7, %v930_v45  ;;  %vm580_vm12 = vcmp.eq.s32.totalorder %v438_v56, %v1066_v41  ;;  %v367_v61 = vadd.s32 40, %v989_v8  ;;  %v366_v63 = vadd.s32 32, %v989_v8  ;;  %v365_v1 = vadd.s32 24, %v989_v8 }
  0x1b   : > { %846 = vmatmul.msk.f32.vlgmr.msra.gmra.mxu2 %vm250_vm2, %v215_v11  ;;  %272 = vmatpush.msra.mxu0 %v242_v22  ;;  %vm579_vm13 = vcmp.eq.s32.totalorder %v431_v58, %v1066_v41  ;;  %v424_v60 = vand.u32 7, %v368_v59  ;;  %v364_v2 = vadd.s32 16, %v989_v8  ;;  %v389_v5 = vand.u32 7, %v1059_v36 }
  0x1c   : > { %345 = vmatpush.msrb.mxu2 %v855_v23  ;;  %844 = vmatmul.msk.f32.vlgmr.msra.gmra.mxu0 %vm250_vm2, %v240_v24  ;;  %v417_v62 = vand.u32 7, %v367_v61  ;;  %v410_v0 = vand.u32 7, %v366_v63  ;;  %v403_v3 = vand.u32 7, %v365_v1  ;;  %v382_v7 = vand.u32 7, %v989_v8 }
  0x1d   : > { %895 = vmatpush.msk.msra.mxu1 %vm585_vm7, %v930_v45  ;;  %877 = vmatpush.msk.msra.mxu3 %vm584_vm8, %v930_v45  ;;  %vm578_vm14 = vcmp.eq.s32.totalorder %v424_v60, %v1066_v41  ;;  %v396_v4 = vand.u32 7, %v364_v2  ;;  %vm573_vm3 = vcmp.eq.s32.totalorder %v389_v5, %v1066_v41  ;;  %v652_v10 = vand.u32 7, %v1066_v41 }
  0x1e   : > { %346 = vmatpush.msrb.mxu2 %v854_v25  ;;  %vm577_vm15 = vcmp.eq.s32.totalorder %v417_v62, %v1066_v41  ;;  %vm576_vm0 = vcmp.eq.s32.totalorder %v410_v0, %v1066_v41  ;;  %vm575_vm1 = vcmp.eq.s32.totalorder %v403_v3, %v1066_v41  ;;  %vm572_vm4 = vcmp.eq.s32.totalorder %v382_v7, %v1066_v41 }
  0x1f   : > { %896 = vmatpush.msk.msra.mxu1 %vm584_vm8, %v930_v45  ;;  %878 = vmatpush.msk.msra.mxu3 %vm583_vm9, %v930_v45  ;;  %vm660_vm5 = vcmp.eq.s32.totalorder %v652_v10, %v989_v8  ;;  %vm719_vm6 = vcmask 57344   ;;  %vm663_vm7 = vcmask 64512  }
  0x20   : > { %347 = vmatpush.msrb.mxu2 %v853_v26  ;;  %891 = vmatpush.msk.msrb.mxu0 %vm660_vm5, %v930_v45 }
  0x21   : > { %897 = vmatpush.msk.msra.mxu1 %vm583_vm9, %v930_v45  ;;  %879 = vmatpush.msk.msra.mxu3 %vm582_vm10, %v930_v45 }
  0x22   : > { %348 = vmatpush.msrb.mxu2 %v852_v27 }
  0x23   : > { %847 = vmatmul.msk.f32.gmra.mxu2 %vm250_vm2, %v216_v12  ;;  %898 = vmatpush.msk.msra.mxu1 %vm582_vm10, %v930_v45 }
  0x24   : > { %349 = vmatpush.msrb.mxu2 %v851_v28  ;;  %845 = vmatmul.msk.f32.gmra.mxu0 %vm250_vm2, %v234_v29 }
  0x25   : > { %880 = vmatpush.msk.msra.mxu3 %vm581_vm11, %v930_v45  ;;  %899 = vmatpush.msk.msra.mxu1 %vm581_vm11, %v930_v45 }
  0x26   : > { %350 = vmatpush.msrb.mxu2 %v850_v30 }
  0x27   : > { %881 = vmatpush.msk.msra.mxu3 %vm580_vm12, %v930_v45  ;;  %900 = vmatpush.msk.msra.mxu1 %vm580_vm12, %v930_v45 }
  0x28   : > { %351 = vmatpush.msrb.mxu2 %v849_v33 }
  0x29   : > { %882 = vmatpush.msk.msra.mxu3 %vm579_vm13, %v930_v45  ;;  %901 = vmatpush.msk.msra.mxu1 %vm579_vm13, %v930_v45 }
  0x2a   : > { %352 = vmatpush.msrb.mxu2 %v848_v34 }
  0x2b   : > { %856 = vmatmul.msk.f32.vlgmr.msrb.gmra.mxu2 %vm250_vm2, %v314_v35  ;;  %883 = vmatpush.msk.msra.mxu3 %vm578_vm14, %v930_v45 }
  0x2c   : > { %902 = vmatpush.msk.msra.mxu1 %vm578_vm14, %v930_v45 }
  0x2d   : > { %884 = vmatpush.msk.msra.mxu3 %vm577_vm15, %v930_v45 }
  0x2e   : > { %903 = vmatpush.msk.msra.mxu1 %vm577_vm15, %v930_v45 }
  0x2f   : > { %885 = vmatpush.msk.msra.mxu3 %vm576_vm0, %v930_v45 }
  0x30   : > { %904 = vmatpush.msk.msra.mxu1 %vm576_vm0, %v930_v45 }
  0x31   : > { %886 = vmatpush.msk.msra.mxu3 %vm575_vm1, %v930_v45 }
  0x32   : > { %905 = vmatpush.msk.msra.mxu1 %vm575_vm1, %v930_v45 }
  0x33   : > { %857 = vmatmul.msk.f32.gmra.mxu2 %vm250_vm2, %v321_v38  ;;  %vm574_vm2 = vcmp.eq.s32.totalorder %v396_v4, %v1066_v41 }
  0x34   : > { %887 = vmatpush.msk.msra.mxu3 %vm574_vm2, %v930_v45  ;;  %906 = vmatpush.msk.msra.mxu1 %vm574_vm2, %v930_v45 }
  0x36   : > { %888 = vmatpush.msk.msra.mxu3 %vm573_vm3, %v930_v45  ;;  %907 = vmatpush.msk.msra.mxu1 %vm573_vm3, %v930_v45 }
  0x38   : > { %889 = vmatpush.msk.msra.mxu3 %vm572_vm4, %v930_v45  ;;  %908 = vmatpush.msk.msra.mxu1 %vm572_vm4, %v930_v45 }
  0x99   : > { %v274_v11 = vpop.f32.mrf.mxu0 }
  0x9e   : > { %v303_v6 = vpop.f32.mrf.mxu2 }
  0x9f   : > { %v304_v12 = vadd.f32 %v303_v6, %v274_v11 }
  0xa1   : > { %v277_v15 = vpop.f32.mrf.mxu0 }
  0xa6   : > { %v306_v9 = vpop.f32.mrf.mxu2 }
  0xa7   : > { %v307_v16 = vadd.f32 %v306_v9, %v277_v15 }
  0xae   : > { %v354_v13 = vpop.f32.mrf.mxu2 }
  0xaf   : > { %v360_v14 = vadd.f32 %v354_v13, %v304_v12 }
  0xb1   : > { %362 = vst [vmem:[%s208_s24] sm:$0xff] %v360_v14 }
  0xb6   : > { %v357_v17 = vpop.f32.mrf.mxu2 }
  0xb7   : > { %v361_v18 = vadd.f32 %v357_v17, %v307_v16 }
  0xb9   : > { %363 = vst [vmem:[%s208_s24 + $0x8] sm:$0xff] %v361_v18  ;;  %v620_v19 = vadd.f32 %v361_v18, %v360_v14 }
  0xbb   : > { %v621_v20 = vrot.slane %v620_v19, 4 }
  0xbd   : > { %v622_v8 = vadd.f32 %v621_v20, %v620_v19 }
  0xbf   : > { %v623_v21 = vrot.slane %v622_v8, 2 }
  0xc1   : > { %v624_v22 = vadd.f32 %v623_v21, %v622_v8 }
  0xc3   : > { %v625_v23 = vrot.slane %v624_v22, 1 }
  0xc5   : > { %v626_v24 = vadd.f32 %v625_v23, %v624_v22 }
  0xc7   : > { %643 = vmatmul.f32.vlgmr.msra.gmra.mxu3 %v626_v24 }
 0x14a   : > { %v644_v25 = vpop.f32.mrf.mxu3 }
 0x14b   : > { %v647_v26 = vmul.f32 0.00390625, %v644_v25  ;;  %720 = vst.msk [vmem:[%s211_s5] sm:$0x1] %vm719_vm6, %v644_v25 }
 0x14d   : > { %892 = vmatmul.msk.f32.vlgmr.msrb.gmra.mxu0 %vm663_vm7, %v647_v26 }
 0x1ca   : > { %v684_v27 = vpop.f32.mrf.mxu0 }
 0x1cb   : > { %v687_v28 = vperm.slane %v684_v27, 0 }
 0x1cd   : > { %v688_v29 = vsub.f32 %v360_v14, %v687_v28  ;;  %v689_v30 = vsub.f32 %v361_v18, %v687_v28 }
 0x1cf   : > { %v690_v31 = vmul.f32 %v688_v29, %v688_v29  ;;  %v691_v32 = vmul.f32 %v689_v30, %v689_v30 }
 0x1d1   : > { %v692_v33 = vadd.f32 %v691_v32, %v690_v31 }
 0x1d3   : > { %v693_v34 = vrot.slane %v692_v33, 4 }
 0x1d5   : > { %v694_v35 = vadd.f32 %v693_v34, %v692_v33 }
 0x1d7   : > { %v695_v36 = vrot.slane %v694_v35, 2 }
 0x1d9   : > { %v696_v37 = vadd.f32 %v695_v36, %v694_v35 }
 0x1db   : > { %v697_v38 = vrot.slane %v696_v37, 1 }
 0x1dd   : > { %v698_v39 = vadd.f32 %v697_v38, %v696_v37 }
 0x1df   : > { %715 = vmatmul.f32.vlgmr.msra.gmra.mxu1 %v698_v39 }
 0x25c   : > { %v716_v40 = vpop.f32.mrf.mxu1 }
 0x25d   : > { %721 = vst.msk [vmem:[%s214_s29] sm:$0x1] %vm719_vm6, %v716_v40 }
 0x25e PF: > { %s15_s15 = sadd.s32 1, %s928_s15  }
 0x25f   : > { %p12_p4 = scmp.ge.s32.totalorder %s15_s15, 4  }
 0x261   :  { %14 = sbr.rel (!%p12_p4) target bundleno = 1 (0x1), region = 84 }

// kernel: block_forward.4
= control target key start
LH: loop header
LB: loop body
LE: loop exit
PB: predicated region body
PF: predicated region fallthrough
CT: control target
= control target key end

     0   :  { %s1097_s21 = smov 0   ;;  %s1378_s0 = inlined_call_operand.vmem [shape: f32[2,16,128], index: 0, kind: input, shape index: {}]   ;;  %s1379_s1 = inlined_call_operand.vmem [shape: f32[1,8], index: 1, kind: input, shape index: {}]   ;;  %s1380_s2 = inlined_call_operand.vmem [shape: f32[1,8], index: 2, kind: input, shape index: {}]   ;;  %s1381_s3 = inlined_call_operand.vmem [shape: f32[3,128,128], index: 3, kind: input, shape index: {}]   ;;  %s1382_s4 = inlined_call_operand.vmem [shape: f32[2,16,128], index: 4, kind: output, shape index: {0}]   ;;  %s1383_s5 = inlined_call_operand.vmem [shape: f32[2,1,8], index: 5, kind: output, shape index: {1}]   ;;  %s1384_s6 = inlined_call_operand.vmem [shape: f32[2,1,8], index: 6, kind: output, shape index: {2}]  }
   0x1 LB: > { %s942_s22 = sadd.s32 4294967295, %s1059_s21   ;;  %p946_p0 = scmp.ge.s32.totalorder %s1059_s21, 1  ;;  %s1059_s21 = sphi %s1097_s21, %s17_s21  }
   0x2   : > { %p217_p1 = scmp.lt.s32.totalorder %s1059_s21, 3 }
   0x4   : > { %p218_p2 = pnand %p946_p0, %p217_p1 }
   0x5   : > { %p253_p3 = scmp.lt.s32.totalorder (!%p218_p2), %s942_s22, 1 }
   0x6   : > { %221 = sbr.rel (%p218_p2) target bundleno = 721 (0x2d1), region = 36 }
   0xb   : > { %v269_v0 = vlaneseq  ;;  %v971_v1 = vld [vmem:[%s1381_s3 + $0xf8] sm:$0xff]  ;;  %v970_v2 = vld [vmem:[%s1381_s3 + $0xf0] sm:$0xff]  ;;  %v969_v7 = vld [vmem:[%s1381_s3 + $0xe8] sm:$0xff]  ;;  %vm289_vm0 = vcmask 64512   ;;  %v1061_v15 = vmov 1.0   ;;  %s1388_s22 = smov (!%p253_p3, %s942_s22), 1 }
   0xc   : > { %v393_v3 = vld [vmem:[%s1381_s3 + $0x78] sm:$0xff]  ;;  %417 = vmatpush.msra.mxu3 %v971_v1  ;;  %v392_v6 = vld [vmem:[%s1381_s3 + $0x70] sm:$0xff]  ;;  %v391_v8 = vld [vmem:[%s1381_s3 + $0x68] sm:$0xff]  ;;  %s1042_s11 = sshll.u32 %s1388_s22, 4  ;;  %s265_s20 = scalar_lea.vmem %s1383_s5, %s1388_s22 }
   0xd   : > { %v1114_v4 = vshrl.u32 %v269_v0, 7  ;;  %v1116_v5 = vand.u32 127, %v269_v0  ;;  %394 = vmatpush.msra.mxu2 %v393_v3  ;;  %v288_v10 = vld [vmem:[%s1379_s1] sm:$0x1]  ;;  %v988_v13 = vld [vmem:[%s1381_s3 + $0x178] sm:$0xff]  ;;  %v987_v17 = vld [vmem:[%s1381_s3 + $0x170] sm:$0xff]  ;;  %s257_s14 = scalar_lea.vmem %s1378_s0, %s1042_s11  ;;  %s262_s17 = scalar_lea.vmem %s1382_s4, %s1042_s11 }
   0xe   : > { %418 = vmatpush.msra.mxu3 %v970_v2  ;;  %v313_v11 = vld [vmem:[%s1380_s2] sm:$0x1]  ;;  %v967_v18 = vld [vmem:[%s1381_s3 + $0xd8] sm:$0xff]  ;;  %v986_v20 = vld [vmem:[%s1381_s3 + $0x168] sm:$0xff]  ;;  %s268_s25 = scalar_lea.vmem %s1384_s6, %s1388_s22 }
   0xf   : > { %v277_v9 = vand.u32 7, %v1116_v5  ;;  %395 = vmatpush.msra.mxu2 %v392_v6  ;;  %v968_v14 = vld [vmem:[%s1381_s3 + $0xe0] sm:$0xff]  ;;  %v389_v19 = vld [vmem:[%s1381_s3 + $0x58] sm:$0xff]  ;;  %v966_v21 = vld [vmem:[%s1381_s3 + $0xd0] sm:$0xff]  ;;  %vm365_vm2 = vcmp.ge.s32.totalorder %v1114_v4, 1  ;;  %vm369_vm3 = vcmp.lt.s32.totalorder %v1114_v4, 1 }
  0x10   : > { %419 = vmatpush.msra.mxu3 %v969_v7  ;;  %v390_v16 = vld [vmem:[%s1381_s3 + $0x60] sm:$0xff]  ;;  %v388_v22 = vld [vmem:[%s1381_s3 + $0x50] sm:$0xff]  ;;  %v965_v24 = vld [vmem:[%s1381_s3 + $0xc8] sm:$0xff]  ;;  %vm444_vm4 = vcmp.lt.s32.totalorder %v1114_v4, 7 }
  0x11   : > { %vm1135_vm1 = vcmp.eq.s32.totalorder %v277_v9, %v1114_v4  ;;  %396 = vmatpush.msra.mxu2 %v391_v8  ;;  %v985_v23 = vld [vmem:[%s1381_s3 + $0x160] sm:$0xff]  ;;  %v387_v25 = vld [vmem:[%s1381_s3 + $0x48] sm:$0xff]  ;;  %v984_v26 = vld [vmem:[%s1381_s3 + $0x158] sm:$0xff] }
  0x12   : > { %952 = vmatpush.msk.msra.mxu0 %vm1135_vm1, %v1061_v15  ;;  %954 = vmatpush.msk.msra.mxu1 %vm1135_vm1, %v1061_v15  ;;  %v964_v27 = vld [vmem:[%s1381_s3 + $0xc0] sm:$0xff]  ;;  %v983_v29 = vld [vmem:[%s1381_s3 + $0x150] sm:$0xff]  ;;  %v963_v30 = vld [vmem:[%s1381_s3 + $0xb8] sm:$0xff] }
  0x13   : > { %953 = vmatmul.msk.f32.vlgmr.msra.gmra.mxu0 %vm289_vm0, %v288_v10  ;;  %955 = vmatmul.msk.f32.vlgmr.msra.gmra.mxu1 %vm289_vm0, %v313_v11  ;;  %v386_v28 = vld [vmem:[%s1381_s3 + $0x40] sm:$0xff]  ;;  %v385_v31 = vld [vmem:[%s1381_s3 + $0x38] sm:$0xff]  ;;  %v982_v32 = vld [vmem:[%s1381_s3 + $0x148] sm:$0xff] }
  0x14   : > { %470 = vmatpush.msrb.mxu0 %v988_v13  ;;  %420 = vmatpush.msra.mxu3 %v968_v14  ;;  %v962_v33 = vld [vmem:[%s1381_s3 + $0xb0] sm:$0xff]  ;;  %v981_v35 = vld [vmem:[%s1381_s3 + $0x140] sm:$0xff]  ;;  %v961_v36 = vld [vmem:[%s1381_s3 + $0xa8] sm:$0xff]  ;;  %v1289_v13 = vadd.s32 8, %v1114_v4 }
  0x15   : > { %397 = vmatpush.msra.mxu2 %v390_v16  ;;  %v384_v34 = vld [vmem:[%s1381_s3 + $0x30] sm:$0xff]  ;;  %v980_v37 = vld [vmem:[%s1381_s3 + $0x138] sm:$0xff]  ;;  %v960_v39 = vld [vmem:[%s1381_s3 + $0xa0] sm:$0xff] }
  0x16   : > { %471 = vmatpush.msrb.mxu0 %v987_v17  ;;  %421 = vmatpush.msra.mxu3 %v967_v18  ;;  %v979_v38 = vld [vmem:[%s1381_s3 + $0x130] sm:$0xff]  ;;  %v383_v40 = vld [vmem:[%s1381_s3 + $0x28] sm:$0xff]  ;;  %v959_v42 = vld [vmem:[%s1381_s3 + $0x98] sm:$0xff]  ;;  %vm441_vm5 = vcmp.le.s32.totalorder %v1289_v13, 14  ;;  %v510_v17 = vadd.s32 120, %v1114_v4 }
  0x17   : > { %398 = vmatpush.msra.mxu2 %v389_v19  ;;  %v978_v41 = vld [vmem:[%s1381_s3 + $0x128] sm:$0xff]  ;;  %v382_v43 = vld [vmem:[%s1381_s3 + $0x20] sm:$0xff]  ;;  %v958_v45 = vld [vmem:[%s1381_s3 + $0x90] sm:$0xff]  ;;  %v509_v19 = vadd.s32 112, %v1114_v4 }
  0x18   : > { %472 = vmatpush.msrb.mxu0 %v986_v20  ;;  %422 = vmatpush.msra.mxu3 %v966_v21  ;;  %v977_v44 = vld [vmem:[%s1381_s3 + $0x120] sm:$0xff]  ;;  %v381_v46 = vld [vmem:[%s1381_s3 + $0x18] sm:$0xff]  ;;  %v957_v48 = vld [vmem:[%s1381_s3 + $0x88] sm:$0xff]  ;;  %v620_v18 = vand.u32 7, %v510_v17  ;;  %v508_v21 = vadd.s32 104, %v1114_v4 }
  0x19   : > { %399 = vmatpush.msra.mxu2 %v388_v22  ;;  %v976_v47 = vld [vmem:[%s1381_s3 + $0x118] sm:$0xff]  ;;  %v380_v49 = vld [vmem:[%s1381_s3 + $0x10] sm:$0xff]  ;;  %v956_v51 = vld [vmem:[%s1381_s3 + $0x80] sm:$0xff]  ;;  %v613_v20 = vand.u32 7, %v509_v19 }
  0x1a   : > { %473 = vmatpush.msrb.mxu0 %v985_v23  ;;  %423 = vmatpush.msra.mxu3 %v965_v24  ;;  %v975_v50 = vld [vmem:[%s1381_s3 + $0x110] sm:$0xff]  ;;  %v379_v52 = vld [vmem:[%s1381_s3 + $0x8] sm:$0xff]  ;;  %v378_v54 = vld [vmem:[%s1381_s3] sm:$0xff]  ;;  %vm718_vm6 = vcmp.eq.s32.totalorder %v620_v18, %v1116_v5  ;;  %v606_v22 = vand.u32 7, %v508_v21  ;;  %v507_v23 = vadd.s32 96, %v1114_v4 }
  0x1b   : > { %400 = vmatpush.msra.mxu2 %v387_v25  ;;  %v974_v53 = vld [vmem:[%s1381_s3 + $0x108] sm:$0xff]  ;;  %v973_v55 = vld [vmem:[%s1381_s3 + $0x100] sm:$0xff]  ;;  %1006 = vmatpush.msk.msrb.mxu1 %vm718_vm6, %v1061_v15  ;;  %vm717_vm7 = vcmp.eq.s32.totalorder %v613_v20, %v1116_v5  ;;  %v506_v25 = vadd.s32 88, %v1114_v4 }
  0x1c   : > { %474 = vmatpush.msrb.mxu0 %v984_v26  ;;  %424 = vmatpush.msra.mxu3 %v964_v27  ;;  %v337_v57 = vld [vmem:[%s257_s14] sm:$0xff]  ;;  %v338_v58 = vld [vmem:[%s257_s14 + $0x8] sm:$0xff]  ;;  %vm716_vm8 = vcmp.eq.s32.totalorder %v606_v22, %v1116_v5  ;;  %v599_v24 = vand.u32 7, %v507_v23  ;;  %v505_v27 = vadd.s32 80, %v1114_v4 }
  0x1d   : > { %401 = vmatpush.msra.mxu2 %v386_v28  ;;  %1007 = vmatpush.msk.msrb.mxu1 %vm717_vm7, %v1061_v15  ;;  %v592_v26 = vand.u32 7, %v506_v25 }
  0x1e   : > { %475 = vmatpush.msrb.mxu0 %v983_v29  ;;  %425 = vmatpush.msra.mxu3 %v963_v30  ;;  %vm715_vm9 = vcmp.eq.s32.totalorder %v599_v24, %v1116_v5  ;;  %v585_v28 = vand.u32 7, %v505_v27  ;;  %v504_v29 = vadd.s32 72, %v1114_v4 }
  0x1f   : > { %402 = vmatpush.msra.mxu2 %v385_v31  ;;  %1008 = vmatpush.msk.msrb.mxu1 %vm716_vm8, %v1061_v15  ;;  %vm714_vm10 = vcmp.eq.s32.totalorder %v592_v26, %v1116_v5  ;;  %v503_v31 = vadd.s32 64, %v1114_v4 }
  0x20   : > { %476 = vmatpush.msrb.mxu0 %v982_v32  ;;  %426 = vmatpush.msra.mxu3 %v962_v33  ;;  %vm713_vm11 = vcmp.eq.s32.totalorder %v585_v28, %v1116_v5  ;;  %v578_v30 = vand.u32 7, %v504_v29  ;;  %v502_v33 = vadd.s32 56, %v1114_v4 }
  0x21   : > { %403 = vmatpush.msra.mxu2 %v384_v34  ;;  %1009 = vmatpush.msk.msrb.mxu1 %vm715_vm9, %v1061_v15  ;;  %v571_v32 = vand.u32 7, %v503_v31 }
  0x22   : > { %477 = vmatpush.msrb.mxu0 %v981_v35  ;;  %427 = vmatpush.msra.mxu3 %v961_v36  ;;  %vm712_vm12 = vcmp.eq.s32.totalorder %v578_v30, %v1116_v5  ;;  %v564_v34 = vand.u32 7, %v502_v33  ;;  %v501_v35 = vadd.s32 48, %v1114_v4 }
  0x23   : > { %404 = vmatpush.msra.mxu2 %v383_v40  ;;  %1010 = vmatpush.msk.msrb.mxu1 %vm714_vm10, %v1061_v15  ;;  %vm711_vm13 = vcmp.eq.s32.totalorder %v571_v32, %v1116_v5 }
  0x24   : > { %478 = vmatpush.msrb.mxu0 %v980_v37  ;;  %428 = vmatpush.msra.mxu3 %v960_v39  ;;  %vm710_vm14 = vcmp.eq.s32.totalorder %v564_v34, %v1116_v5  ;;  %v557_v36 = vand.u32 7, %v501_v35  ;;  %v500_v37 = vadd.s32 40, %v1114_v4  ;;  %v499_v39 = vadd.s32 32, %v1114_v4 }
  0x25   : > { %405 = vmatpush.msra.mxu2 %v382_v43  ;;  %1011 = vmatpush.msk.msrb.mxu1 %vm713_vm11, %v1061_v15 }
  0x26   : > { %479 = vmatpush.msrb.mxu0 %v979_v38  ;;  %429 = vmatpush.msra.mxu3 %v959_v42  ;;  %vm709_vm15 = vcmp.eq.s32.totalorder %v557_v36, %v1116_v5  ;;  %v550_v38 = vand.u32 7, %v500_v37  ;;  %v543_v40 = vand.u32 7, %v499_v39  ;;  %v497_v42 = vadd.s32 16, %v1114_v4 }
  0x27   : > { %406 = vmatpush.msra.mxu2 %v381_v46  ;;  %1012 = vmatpush.msk.msrb.mxu1 %vm712_vm12, %v1061_v15  ;;  %v515_v46 = vand.u32 7, %v1114_v4 }
  0x28   : > { %480 = vmatpush.msrb.mxu0 %v978_v41  ;;  %430 = vmatpush.msra.mxu3 %v958_v45  ;;  %v498_v41 = vadd.s32 24, %v1114_v4  ;;  %v522_v45 = vand.u32 7, %v1289_v13 }
  0x29   : > { %407 = vmatpush.msra.mxu2 %v380_v49  ;;  %1013 = vmatpush.msk.msrb.mxu1 %vm711_vm13, %v1061_v15 }
  0x2a   : > { %481 = vmatpush.msrb.mxu0 %v977_v44  ;;  %431 = vmatpush.msra.mxu3 %v957_v48  ;;  %v536_v43 = vand.u32 7, %v498_v41  ;;  %v529_v44 = vand.u32 7, %v497_v42 }
  0x2b   : > { %408 = vmatpush.msra.mxu2 %v379_v52  ;;  %1014 = vmatpush.msk.msrb.mxu1 %vm710_vm14, %v1061_v15 }
  0x2c   : > { %482 = vmatpush.msrb.mxu0 %v976_v47  ;;  %432 = vmatpush.msra.mxu3 %v956_v51 }
  0x2d   : > { %409 = vmatpush.msra.mxu2 %v378_v54  ;;  %1015 = vmatpush.msk.msrb.mxu1 %vm709_vm15, %v1061_v15 }
  0x2e   : > { %483 = vmatpush.msrb.mxu0 %v975_v50 }
  0x2f   : > { %1024 = vmatpush.msk.msrb.mxu2 %vm718_vm6, %v1061_v15  ;;  %vm704_vm6 = vcmp.eq.s32.totalorder %v522_v45, %v1116_v5 }
  0x30   : > { %484 = vmatpush.msrb.mxu0 %v974_v53 }
  0x31   : > { %1025 = vmatpush.msk.msrb.mxu2 %vm717_vm7, %v1061_v15  ;;  %vm703_vm7 = vcmp.eq.s32.totalorder %v515_v46, %v1116_v5 }
  0x32   : > { %485 = vmatpush.msrb.mxu0 %v973_v55 }
  0x33   : > { %1026 = vmatpush.msk.msrb.mxu2 %vm716_vm8, %v1061_v15 }
  0x35   : > { %1027 = vmatpush.msk.msrb.mxu2 %vm715_vm9, %v1061_v15 }
  0x37   : > { %1028 = vmatpush.msk.msrb.mxu2 %vm714_vm10, %v1061_v15 }
  0x39   : > { %1029 = vmatpush.msk.msrb.mxu2 %vm713_vm11, %v1061_v15 }
  0x3b   : > { %1030 = vmatpush.msk.msrb.mxu2 %vm712_vm12, %v1061_v15 }
  0x3d   : > { %1031 = vmatpush.msk.msrb.mxu2 %vm711_vm13, %v1061_v15 }
  0x3f   : > { %1032 = vmatpush.msk.msrb.mxu2 %vm710_vm14, %v1061_v15 }
  0x41   : > { %1033 = vmatpush.msk.msrb.mxu2 %vm709_vm15, %v1061_v15 }
  0x90   : > { %v310_v56 = vpop.f32.mrf.mxu0  ;;  %v334_v59 = vpop.f32.mrf.mxu1 }
  0x91   : > { %v339_v60 = vperm.slane %v310_v56, 0  ;;  %v342_v61 = vperm.slane %v334_v59, 0 }
  0x93   : > { %v340_v62 = vmul.f32 %v339_v60, %v337_v57  ;;  %v341_v63 = vmul.f32 %v339_v60, %v338_v58 }
  0x95   : > { %v343_v0 = vadd.f32 %v342_v61, %v340_v62  ;;  %v344_v1 = vadd.f32 %v342_v61, %v341_v63 }
  0x97   : > { %v345_v2 = vmax.f32 %v343_v0, 0.0  ;;  %v346_v3 = vmax.f32 %v344_v1, 0.0 }
  0x99   : > { %433 = vmatmul.f32.vlgmr.msra.gmra.mxu3 %v345_v2  ;;  %v367_v6 = vrot.slane %v345_v2, 7  ;;  %v368_v7 = vrot.slane %v346_v3, 7  ;;  %v442_v8 = vrot.slane %v345_v2, 1  ;;  %v443_v9 = vrot.slane %v346_v3, 1 }
  0x9b   : > { %v371_v10 = vsel %vm369_vm3, %v368_v7, %v367_v6  ;;  %v445_v11 = vsel %vm444_vm4, %v442_v8, %v443_v9  ;;  %v370_v14 = vsel %vm369_vm3, %v367_v6, %v368_v7  ;;  %v446_v16 = vsel %vm444_vm4, %v443_v9, %v442_v8 }
  0x9c   : > { %972 = vmatmul.msk.f32.vlgmr.msra.gmra.mxu2 %vm365_vm2, %v371_v10  ;;  %486 = vmatmul.f32.vlgmr.msrb.gmra.mxu0 %v445_v11  ;;  %vm708_vm2 = vcmp.eq.s32.totalorder %v550_v38, %v1116_v5  ;;  %vm707_vm3 = vcmp.eq.s32.totalorder %v543_v40, %v1116_v5  ;;  %vm706_vm4 = vcmp.eq.s32.totalorder %v536_v43, %v1116_v5 }
  0x9d   : > { %1016 = vmatpush.msk.msrb.mxu1 %vm708_vm2, %v1061_v15  ;;  %1034 = vmatpush.msk.msrb.mxu2 %vm708_vm2, %v1061_v15 }
  0x9f   : > { %1017 = vmatpush.msk.msrb.mxu1 %vm707_vm3, %v1061_v15  ;;  %1035 = vmatpush.msk.msrb.mxu2 %vm707_vm3, %v1061_v15 }
  0xa1   : > { %436 = vmatmul.f32.gmra.mxu3 %v346_v3  ;;  %1018 = vmatpush.msk.msrb.mxu1 %vm706_vm4, %v1061_v15 }
  0xa2   : > { %1036 = vmatpush.msk.msrb.mxu2 %vm706_vm4, %v1061_v15 }
  0xa4   : > { %413 = vmatmul.f32.gmra.mxu2 %v370_v14  ;;  %989 = vmatmul.msk.f32.gmra.mxu0 %vm441_vm5, %v446_v16  ;;  %vm705_vm5 = vcmp.eq.s32.totalorder %v529_v44, %v1116_v5 }
  0xa5   : > { %1019 = vmatpush.msk.msrb.mxu1 %vm705_vm5, %v1061_v15  ;;  %1037 = vmatpush.msk.msrb.mxu2 %vm705_vm5, %v1061_v15 }
  0xa7   : > { %1020 = vmatpush.msk.msrb.mxu1 %vm704_vm6, %v1061_v15  ;;  %1038 = vmatpush.msk.msrb.mxu2 %vm704_vm6, %v1061_v15 }
  0xa9   : > { %1021 = vmatpush.msk.msrb.mxu1 %vm703_vm7, %v1061_v15  ;;  %1039 = vmatpush.msk.msrb.mxu2 %vm703_vm7, %v1061_v15 }
  0xab   : > { %1022 = vmatpush.msk.msra.mxu1 %vm1135_vm1, %v1061_v15  ;;  %vm834_vm1 = vcmask 57344  }
 0x119   : > { %v487_v47 = vpop.f32.mrf.mxu0 }
 0x11c   : > { %v434_v4 = vpop.f32.mrf.mxu3 }
 0x11f   : > { %v411_v48 = vpop.f32.mrf.mxu2 }
 0x120   : > { %v435_v49 = vadd.f32 %v434_v4, %v411_v48 }
 0x121   : > { %v490_v53 = vpop.f32.mrf.mxu0 }
 0x122   : > { %v493_v5 = vadd.f32 %v487_v47, %v435_v49 }
 0x124   : > { %495 = vst [vmem:[%s262_s17] sm:$0xff] %v493_v5  ;;  %v437_v50 = vpop.f32.mrf.mxu3 }
 0x127   : > { %v414_v51 = vpop.f32.mrf.mxu2 }
 0x128   : > { %v438_v52 = vadd.f32 %v437_v50, %v414_v51 }
 0x12a   : > { %v494_v54 = vadd.f32 %v490_v53, %v438_v52 }
 0x12c   : > { %496 = vst [vmem:[%s262_s17 + $0x8] sm:$0xff] %v494_v54  ;;  %v751_v12 = vadd.f32 %v494_v54, %v493_v5 }
 0x12e   : > { %v752_v15 = vrot.slane %v751_v12, 4 }
 0x130   : > { %v753_v55 = vadd.f32 %v752_v15, %v751_v12 }
 0x132   : > { %v754_v56 = vrot.slane %v753_v55, 2 }
 0x134   : > { %v755_v57 = vadd.f32 %v754_v56, %v753_v55 }
 0x136   : > { %v756_v58 = vrot.slane %v755_v57, 1 }
 0x138   : > { %v757_v59 = vadd.f32 %v756_v58, %v755_v57 }
 0x13a   : > { %774 = vmatmul.f32.vlgmr.msrb.gmra.mxu1 %v757_v59 }
 0x1b7   : > { %v775_v60 = vpop.f32.mrf.mxu1 }
 0x1b8   : > { %v778_v61 = vmul.f32 0.00390625, %v775_v60  ;;  %835 = vst.msk [vmem:[%s265_s20] sm:$0x1] %vm834_vm1, %v775_v60 }
 0x1ba   : > { %1023 = vmatmul.msk.f32.vlgmr.msra.gmra.mxu1 %vm289_vm0, %v778_v61 }
 0x237   : > { %v799_v62 = vpop.f32.mrf.mxu1 }
 0x238   : > { %v802_v63 = vperm.slane %v799_v62, 0 }
 0x23a   : > { %v803_v0 = vsub.f32 %v493_v5, %v802_v63  ;;  %v804_v1 = vsub.f32 %v494_v54, %v802_v63 }
 0x23c   : > { %v805_v2 = vmul.f32 %v803_v0, %v803_v0  ;;  %v806_v3 = vmul.f32 %v804_v1, %v804_v1 }
 0x23e   : > { %v807_v6 = vadd.f32 %v806_v3, %v805_v2 }
 0x240   : > { %v808_v7 = vrot.slane %v807_v6, 4 }
 0x242   : > { %v809_v8 = vadd.f32 %v808_v7, %v807_v6 }
 0x244   : > { %v810_v9 = vrot.slane %v809_v8, 2 }
 0x246   : > { %v811_v10 = vadd.f32 %v810_v9, %v809_v8 }
 0x248   : > { %v812_v11 = vrot.slane %v811_v10, 1 }
 0x24a   : > { %v813_v13 = vadd.f32 %v812_v11, %v811_v10 }
 0x24c   : > { %830 = vmatmul.f32.vlgmr.msrb.gmra.mxu2 %v813_v13 }
 0x2cf   : > { %v831_v14 = vpop.f32.mrf.mxu2 }
 0x2d0   : > { %836 = vst.msk [vmem:[%s268_s25] sm:$0x1] %vm834_vm1, %v831_v14 }
 0x2d1 PF: > { %s17_s21 = sadd.s32 1, %s1059_s21  }
 0x2d2   : > { %p14_p4 = scmp.ge.s32.totalorder %s17_s21, 4  }
 0x2d4   :  { %16 = sbr.rel (!%p14_p4) target bundleno = 1 (0x1), region = 92 }

// kernel: block_forward.5
= control target key start
LH: loop header
LB: loop body
LE: loop exit
PB: predicated region body
PF: predicated region fallthrough
CT: control target
= control target key end

     0   :  { %s362_s12 = smov 0   ;;  %s385_s0 = inlined_call_operand.vmem [shape: f32[2,16,128], index: 0, kind: input, shape index: {}]   ;;  %s386_s1 = inlined_call_operand.vmem [shape: f32[1,8], index: 1, kind: input, shape index: {}]   ;;  %s387_s2 = inlined_call_operand.vmem [shape: f32[1,8], index: 2, kind: input, shape index: {}]   ;;  %s388_s3 = inlined_call_operand.vmem [shape: f32[2,16,128], index: 3, kind: output, shape index: {}]  }
   0x1 LB: > { %s306_s13 = sadd.s32 4294967295, %s339_s12   ;;  %p310_p0 = scmp.ge.s32.totalorder %s339_s12, 1  ;;  %s339_s12 = sphi %s362_s12, %s13_s12  }
   0x2   : > { %p137_p1 = scmp.lt.s32.totalorder %s339_s12, 3 }
   0x4   : > { %p138_p2 = pnand %p310_p0, %p137_p1 }
   0x5   : > { %p161_p3 = scmp.lt.s32.totalorder (!%p138_p2), %s306_s13, 1 }
   0x6   : > { %141 = sbr.rel (%p138_p2) target bundleno = 155 (0x9b), region = 32 }
   0xb   : > { %v171_v0 = vlaneseq  ;;  %v190_v4 = vld [vmem:[%s386_s1] sm:$0x1]  ;;  %vm191_vm0 = vcmask 64512   ;;  %v341_v6 = vmov 1.0   ;;  %s390_s13 = smov (!%p161_p3, %s306_s13), 1 }
   0xc   : > { %v215_v5 = vld [vmem:[%s387_s2] sm:$0x1]  ;;  %s322_s18 = sshll.u32 %s390_s13, 4 }
   0xd   : > { %v172_v1 = vshrl.u32 %v171_v0, 7  ;;  %v174_v2 = vand.u32 127, %v171_v0  ;;  %s165_s21 = scalar_lea.vmem %s385_s0, %s322_s18  ;;  %s170_s24 = scalar_lea.vmem %s388_s3, %s322_s18 }
   0xe   : > { %v239_v8 = vld [vmem:[%s165_s21] sm:$0xff]  ;;  %v240_v9 = vld [vmem:[%s165_s21 + $0x8] sm:$0xff] }
   0xf   : > { %v179_v3 = vand.u32 7, %v174_v2 }
  0x11   : > { %vm187_vm1 = vcmp.eq.s32.totalorder %v179_v3, %v172_v1 }
  0x12   : > { %316 = vmatpush.msk.msra.mxu0 %vm187_vm1, %v341_v6  ;;  %318 = vmatpush.msk.msra.mxu1 %vm187_vm1, %v341_v6 }
  0x13   : > { %317 = vmatmul.msk.f32.vlgmr.msra.gmra.mxu0 %vm191_vm0, %v190_v4  ;;  %319 = vmatmul.msk.f32.vlgmr.msra.gmra.mxu1 %vm191_vm0, %v215_v5 }
  0x90   : > { %v212_v7 = vpop.f32.mrf.mxu0  ;;  %v236_v10 = vpop.f32.mrf.mxu1 }
  0x91   : > { %v241_v11 = vperm.slane %v212_v7, 0  ;;  %v244_v12 = vperm.slane %v236_v10, 0 }
  0x93   : > { %v242_v13 = vmul.f32 %v241_v11, %v239_v8  ;;  %v243_v14 = vmul.f32 %v241_v11, %v240_v9 }
  0x95   : > { %v245_v15 = vadd.f32 %v244_v12, %v242_v13  ;;  %v246_v16 = vadd.f32 %v244_v12, %v243_v14 }
  0x97   : > { %v247_v17 = vmax.f32 %v245_v15, 0.0  ;;  %v248_v18 = vmax.f32 %v246_v16, 0.0 }
  0x99   : > { %249 = vst [vmem:[%s170_s24] sm:$0xff] %v247_v17 }
  0x9a   : > { %250 = vst [vmem:[%s170_s24 + $0x8] sm:$0xff] %v248_v18 }
  0x9b PF: > { %s13_s12 = sadd.s32 1, %s339_s12  }
  0x9c   : > { %p10_p4 = scmp.ge.s32.totalorder %s13_s12, 4  }
  0x9e   :  { %12 = sbr.rel (!%p10_p4) target bundleno = 1 (0x1), region = 62 }

</bundles_post_ra>
